<compile_context>
chip_gen: v7x
topology: tpu7x:2x2x1
jax: 0.10.0
libtpu: 0.0.40
codegen_flags: <defaults>
</compile_context>

<pallas_src>
import functools

import jax
import jax.numpy as jnp
import numpy as np
from jax import lax
from jax.experimental import pallas as pl
from jax.experimental.pallas import tpu as pltpu


# ---------------------------------------------------------------------------
# Pallas kernel
# ---------------------------------------------------------------------------
def make_embed_rnn_kernel(num_layers, k, hidden, offsets):
    """Build a kernel closure for fixed (static) hyper-parameters.

    offsets = (OFF_BIAS, OFF_W_HH, OFF_W_IH, OFF_EPI) — static row offsets into the
    packed parameter slab.
    """
    H = hidden
    G = 4 * H
    OFF_BIAS, OFF_W_HH, OFF_W_IH, OFF_EPI = offsets

    def kernel(x_ref, slab_ref, out_ref, seq_ref):
        x2d = x_ref[...]                               # (B, T) float32
        B, T = x2d.shape

        # ---- per-lane gate-activation constants (hoisted out of all loops) ----
        # sigmoid(x) = 0.5 * tanh(0.5 * x) + 0.5 ; g-gate lanes stay plain tanh.
        lane = lax.broadcasted_iota(jnp.int32, (1, G), 1)
        is_tanh = (lane >= 2 * H) & (lane < 3 * H)
        pre_scale = jnp.broadcast_to(
            jnp.where(is_tanh, 1.0, 0.5).astype(jnp.float32), (B, G))   # also post-mul
        post_add = jnp.broadcast_to(
            jnp.where(is_tanh, 0.0, 0.5).astype(jnp.float32), (B, G))

        # ---- layer-0 input projection: contraction dim == traffic_dim == 1 ----
        # Rank-1 update -> VPU outer product (no MXU).  Fused bias added here.
        w_ih0_b = jnp.broadcast_to(slab_ref[0:1, :], (B, G))            # (B, 4H)
        b0_b = jnp.broadcast_to(slab_ref[OFF_BIAS:OFF_BIAS + 1, :], (B, G))
        traffic = x2d[:, :k]                                            # (B, k)
        xp_t = [traffic[:, t:t + 1] * w_ih0_b + b0_b for t in range(k)]  # k x (B, 4H)

        h = jnp.zeros((B, H), jnp.float32)
        for l in range(num_layers):
            if l > 0:
                # ---- input projections for all k steps in one MXU matmul ----
                w_ih_l = slab_ref[OFF_W_IH + (l - 1) * H:OFF_W_IH + l * H, :]   # (H, 4H)
                b_l = slab_ref[OFF_BIAS + l:OFF_BIAS + l + 1, :]                # (1, 4H)
                stacked = seq_ref[...]                                          # (k*B, H)
                proj = jnp.dot(stacked, w_ih_l,
                               preferred_element_type=jnp.float32) + b_l        # (k*B, 4H)
                xp_t = [proj[t * B:(t + 1) * B, :] for t in range(k)]

            w_hh_l = slab_ref[OFF_W_HH + l * H:OFF_W_HH + (l + 1) * H, :]       # (H, 4H)
            # TODO(synk): pltpu.matmul_push_rhs(w_hh_l) once per layer + per-step
            # matmul_acc_lhs/matmul_pop would avoid reloading W_hh into the systolic
            # array on every serially-dependent step.
            h = jnp.zeros((B, H), jnp.float32)
            c = jnp.zeros((B, H), jnp.float32)
            write_seq = l < num_layers - 1
            for t in range(k):                 # serial recurrence: 1 MXU push / step
                gates = xp_t[t] + jnp.dot(h, w_hh_l, preferred_element_type=jnp.float32)
                # Single EUP pass over the whole 128-lane tile (PyTorch order i,f,g,o).
                act = jnp.tanh(gates * pre_scale) * pre_scale + post_add
                i_g = act[:, 0 * H:1 * H]
                f_g = act[:, 1 * H:2 * H]
                g_g = act[:, 2 * H:3 * H]
                o_g = act[:, 3 * H:4 * H]
                c = f_g * c + i_g * g_g
                h = o_g * jnp.tanh(c)
                if write_seq:
                    seq_ref[t * B:(t + 1) * B, :] = h   # stage for next layer (off chain)

        # ---- epilogue: embeddings + Linear folded into VPU mul + lane reduce ----
        # fold row: cols 0..6 = wd_table @ W_out_wd^T + b_out, col 7 pad, 8..31 = hours.
        epi = slab_ref[OFF_EPI:OFF_EPI + 2, :]          # (2, 4H)
        w_out_row = epi[0:1, 0:H]                       # (1, H)  lane-dense
        fold_row = epi[1:2, 0:32]                       # (1, 32) lane-dense
        wd_idx = x2d[:, T - 2:T - 1].astype(jnp.int32)  # (B, 1)  matches .long()
        hr_idx = x2d[:, T - 1:T].astype(jnp.int32)      # (B, 1)
        cols = lax.broadcasted_iota(jnp.int32, (B, 32), 1)
        onehot2 = ((cols == wd_idx) | (cols == (hr_idx + 8))).astype(jnp.float32)  # (B, 32)

        out_h = jnp.sum(h * w_out_row, axis=-1, keepdims=True)         # (B, 1)
        out_e = jnp.sum(onehot2 * fold_row, axis=-1, keepdims=True)    # (B, 1)
        out_ref[...] = out_h + out_e

    return kernel


# ---------------------------------------------------------------------------
# Wrapper: packs ALL parameters into one lane-dense slab (trace-time JAX glue)
# ---------------------------------------------------------------------------
def embed_rnn_forward(x, params, *, num_layers, k, hidden, traffic_dim, hour_dim, wd_dim):
    B, T, D = x.shape
    assert D == traffic_dim == 1, "PyTorch forward only type-checks for traffic_dim == 1"
    L, H, G = num_layers, hidden, 4 * hidden
    assert H % 8 == 0 and G >= 32

    x2d = x[:, :, 0].astype(jnp.float32)                                # (B, T)

    # Static row offsets (header padded to a multiple of 8 so every (H, G) weight
    # block starts on an (8,128)-tile boundary).
    header = ((1 + L + 7) // 8) * 8
    OFF_BIAS = 1
    OFF_W_HH = header
    OFF_W_IH = header + L * H
    OFF_EPI = header + (2 * L - 1) * H
    total_rows = ((OFF_EPI + 2 + 7) // 8) * 8

    def pad_lanes(a):
        a = a.astype(jnp.float32)
        return jnp.pad(a, ((0, 0), (0, G - a.shape[1])))

    rows = [params["w_ih_0"].T.astype(jnp.float32)]                     # row 0: (1, 4H)
    for l in range(L):                                                  # rows 1..L: fused biases
        rows.append((params[f"b_ih_{l}"] + params[f"b_hh_{l}"])[None, :].astype(jnp.float32))
    if header > 1 + L:
        rows.append(jnp.zeros((header - (1 + L), G), jnp.float32))      # header pad
    for l in range(L):                                                  # W_hh stack
        rows.append(params[f"w_hh_{l}"].T.astype(jnp.float32))          # (H, 4H)
    for l in range(1, L):                                               # W_ih stack (layers >= 1)
        rows.append(params[f"w_ih_{l}"].T.astype(jnp.float32))          # (H, 4H)

    # Epilogue rows: lane-dense output weights + folded embedding/output-bias table.
    w_out = params["w_out"].astype(jnp.float32)                         # (1, H + wd + hr)
    rows.append(pad_lanes(w_out[:, :H]))                                # (1, 4H)
    fold_wd = (params["wd_table"].astype(jnp.float32) @ w_out[:, H:H + wd_dim].T
               + params["b_out"][None, :].astype(jnp.float32))          # (7, 1)
    fold_hr = params["hour_table"].astype(jnp.float32) @ w_out[:, H + wd_dim:].T   # (24, 1)
    fold_vec = jnp.concatenate(
        [fold_wd[:, 0], jnp.zeros((1,), jnp.float32), fold_hr[:, 0]])[None, :]      # (1, 32)
    rows.append(pad_lanes(fold_vec))

    slab = jnp.concatenate(rows, axis=0)
    if total_rows > slab.shape[0]:
        slab = jnp.pad(slab, ((0, total_rows - slab.shape[0]), (0, 0)))  # (R, 4H)

    kernel = make_embed_rnn_kernel(num_layers, k, hidden,
                                   (OFF_BIAS, OFF_W_HH, OFF_W_IH, OFF_EPI))
    return pl.pallas_call(
        kernel,
        out_shape=jax.ShapeDtypeStruct((B, traffic_dim), jnp.float32),
        in_specs=[pl.BlockSpec(memory_space=pltpu.MemorySpace.VMEM),
                  pl.BlockSpec(memory_space=pltpu.MemorySpace.VMEM)],
        out_specs=pl.BlockSpec(memory_space=pltpu.MemorySpace.VMEM),
        scratch_shapes=[pltpu.VMEM((k * B, H), jnp.float32)],
    )(x2d, slab)


# ---------------------------------------------------------------------------
# Pure-JAX reference (same math as the PyTorch module) for a correctness check
# ---------------------------------------------------------------------------
def embed_rnn_reference(x, params, *, num_layers, k, hidden):
    x = x.astype(jnp.float32)
    B, T, _ = x.shape
    H = hidden
    wd_idx = x[:, T - 2, 0].astype(jnp.int32)
    hr_idx = x[:, T - 1, 0].astype(jnp.int32)
    wd_emb = params["wd_table"][wd_idx]
    hr_emb = params["hour_table"][hr_idx]

    seq = [x[:, t, :] for t in range(k)]
    for l in range(num_layers):
        w_ih, w_hh = params[f"w_ih_{l}"], params[f"w_hh_{l}"]
        b_ih, b_hh = params[f"b_ih_{l}"], params[f"b_hh_{l}"]
        h = jnp.zeros((B, H), jnp.float32)
        c = jnp.zeros((B, H), jnp.float32)
        outs = []
        for t in range(k):
            gates = seq[t] @ w_ih.T + h @ w_hh.T + b_ih + b_hh
            i_g = jax.nn.sigmoid(gates[:, 0 * H:1 * H])
            f_g = jax.nn.sigmoid(gates[:, 1 * H:2 * H])
            g_g = jnp.tanh(gates[:, 2 * H:3 * H])
            o_g = jax.nn.sigmoid(gates[:, 3 * H:4 * H])
            c = f_g * c + i_g * g_g
            h = o_g * jnp.tanh(c)
            outs.append(h)
        seq = outs
    out_in = jnp.concatenate([seq[-1], wd_emb, hr_emb], axis=1)
    return out_in @ params["w_out"].T + params["b_out"]


# ---------------------------------------------------------------------------
# Main
# ---------------------------------------------------------------------------
if __name__ == "__main__":
    traffic_dim = 1
    hour_embed_dim = 8
    week_day_embed_dim = 4
    rnn_hidden_size = 32
    rnn_num_layers = 2
    k = 8          # time_step
    B = 8          # batch

    key = jax.random.PRNGKey(0)
    keys = jax.random.split(key, 32)
    ki = iter(keys)

    def init(shape, scale=0.1):
        return scale * jax.random.normal(next(ki), shape, dtype=jnp.float32)

    params = {
        "hour_table": init((24, hour_embed_dim)),
        "wd_table": init((7, week_day_embed_dim)),
        "w_out": init((traffic_dim, rnn_hidden_size + week_day_embed_dim + hour_embed_dim)),
        "b_out": init((traffic_dim,)),
    }
    for l in range(rnn_num_layers):
        in_l = traffic_dim if l == 0 else rnn_hidden_size
        params[f"w_ih_{l}"] = init((4 * rnn_hidden_size, in_l))
        params[f"w_hh_{l}"] = init((4 * rnn_hidden_size, rnn_hidden_size))
        params[f"b_ih_{l}"] = init((4 * rnn_hidden_size,))
        params[f"b_hh_{l}"] = init((4 * rnn_hidden_size,))

    # Input x: (B, k + 2, traffic_dim); first k rows are traffic, row -2 = weekday idx,
    # row -1 = hour idx (stored as floats, like the PyTorch data pipeline).
    traffic = jax.random.normal(next(ki), (B, k, traffic_dim), dtype=jnp.float32)
    wd = jax.random.randint(next(ki), (B, 1, traffic_dim), 0, 7).astype(jnp.float32)
    hr = jax.random.randint(next(ki), (B, 1, traffic_dim), 0, 24).astype(jnp.float32)
    x = jnp.concatenate([traffic, wd, hr], axis=1)   # (B, k + 2, 1)

    fwd = functools.partial(
        embed_rnn_forward,
        num_layers=rnn_num_layers, k=k, hidden=rnn_hidden_size,
        traffic_dim=traffic_dim, hour_dim=hour_embed_dim, wd_dim=week_day_embed_dim,
    )

    out = jax.jit(lambda xx: fwd(xx, params))(x)
    out = jax.block_until_ready(out)

    ref = embed_rnn_reference(x, params, num_layers=rnn_num_layers, k=k, hidden=rnn_hidden_size)
    np.testing.assert_allclose(np.asarray(out), np.asarray(ref), atol=1e-3, rtol=1e-3)

    print("KERNEL_OK")
</pallas_src>

<mosaic_0001>
module attributes {stable_mosaic.version = 11 : i64} {
  func.func @kernel(%arg0: memref<8x10xf32, #tpu.memory_space<vmem>>, %arg1: memref<112x128xf32, #tpu.memory_space<vmem>>, %arg2: memref<8x1xf32, #tpu.memory_space<vmem>>, %arg3: memref<64x32xf32, #tpu.memory_space<vmem>>) attributes {dimension_semantics = [], scalar_prefetch = 0 : i64, scratch_operands = 1 : i64, tpu.core_type = #tpu.core_type<tc>} {
    %c0 = arith.constant 0 : index
    %c0_0 = arith.constant 0 : index
    %0 = vector.load %arg0[%c0, %c0_0] : memref<8x10xf32, #tpu.memory_space<vmem>>, vector<8x10xf32>
    %1 = tpu.iota {dimensions = array<i32: 1>} : vector<1x128xi32>
    %c64_i32 = arith.constant 64 : i32
    %2 = vector.broadcast %c64_i32 : i32 to vector<1x128xi32>
    %3 = arith.cmpi sge, %1, %2 : vector<1x128xi32>
    %c96_i32 = arith.constant 96 : i32
    %4 = vector.broadcast %c96_i32 : i32 to vector<1x128xi32>
    %5 = arith.cmpi slt, %1, %4 : vector<1x128xi32>
    %6 = arith.andi %3, %5 : vector<1x128xi1>
    %cst = arith.constant 1.000000e+00 : f32
    %cst_1 = arith.constant 5.000000e-01 : f32
    %7 = vector.broadcast %cst : f32 to vector<1x128xf32>
    %8 = vector.broadcast %cst_1 : f32 to vector<1x128xf32>
    %9 = arith.select %6, %7, %8 : vector<1x128xi1>, vector<1x128xf32>
    %10 = vector.shape_cast %9 : vector<1x128xf32> to vector<1x128xf32>
    %11 = vector.broadcast %10 : vector<1x128xf32> to vector<8x128xf32>
    %cst_2 = arith.constant 0.000000e+00 : f32
    %cst_3 = arith.constant 5.000000e-01 : f32
    %12 = vector.broadcast %cst_2 : f32 to vector<1x128xf32>
    %13 = vector.broadcast %cst_3 : f32 to vector<1x128xf32>
    %14 = arith.select %6, %12, %13 : vector<1x128xi1>, vector<1x128xf32>
    %15 = vector.shape_cast %14 : vector<1x128xf32> to vector<1x128xf32>
    %16 = vector.broadcast %15 : vector<1x128xf32> to vector<8x128xf32>
    %c0_4 = arith.constant 0 : index
    %c0_5 = arith.constant 0 : index
    %17 = vector.load %arg1[%c0_4, %c0_5] : memref<112x128xf32, #tpu.memory_space<vmem>>, vector<1x128xf32>
    %18 = vector.shape_cast %17 : vector<1x128xf32> to vector<1x128xf32>
    %19 = vector.broadcast %18 : vector<1x128xf32> to vector<8x128xf32>
    %c1 = arith.constant 1 : index
    %c0_6 = arith.constant 0 : index
    %20 = vector.load %arg1[%c1, %c0_6] : memref<112x128xf32, #tpu.memory_space<vmem>>, vector<1x128xf32>
    %21 = vector.shape_cast %20 : vector<1x128xf32> to vector<1x128xf32>
    %22 = vector.broadcast %21 : vector<1x128xf32> to vector<8x128xf32>
    %23 = vector.extract_strided_slice %0 {offsets = [0, 0], sizes = [8, 8], strides = [1, 1]} : vector<8x10xf32> to vector<8x8xf32>
    %24 = vector.extract_strided_slice %23 {offsets = [0, 0], sizes = [8, 1], strides = [1, 1]} : vector<8x8xf32> to vector<8x1xf32>
    %25 = vector.broadcast %24 : vector<8x1xf32> to vector<8x128xf32>
    %26 = arith.mulf %25, %19 : vector<8x128xf32>
    %27 = arith.addf %26, %22 : vector<8x128xf32>
    %28 = vector.extract_strided_slice %23 {offsets = [0, 1], sizes = [8, 1], strides = [1, 1]} : vector<8x8xf32> to vector<8x1xf32>
    %29 = vector.broadcast %28 : vector<8x1xf32> to vector<8x128xf32>
    %30 = arith.mulf %29, %19 : vector<8x128xf32>
    %31 = arith.addf %30, %22 : vector<8x128xf32>
    %32 = vector.extract_strided_slice %23 {offsets = [0, 2], sizes = [8, 1], strides = [1, 1]} : vector<8x8xf32> to vector<8x1xf32>
    %33 = vector.broadcast %32 : vector<8x1xf32> to vector<8x128xf32>
    %34 = arith.mulf %33, %19 : vector<8x128xf32>
    %35 = arith.addf %34, %22 : vector<8x128xf32>
    %36 = vector.extract_strided_slice %23 {offsets = [0, 3], sizes = [8, 1], strides = [1, 1]} : vector<8x8xf32> to vector<8x1xf32>
    %37 = vector.broadcast %36 : vector<8x1xf32> to vector<8x128xf32>
    %38 = arith.mulf %37, %19 : vector<8x128xf32>
    %39 = arith.addf %38, %22 : vector<8x128xf32>
    %40 = vector.extract_strided_slice %23 {offsets = [0, 4], sizes = [8, 1], strides = [1, 1]} : vector<8x8xf32> to vector<8x1xf32>
    %41 = vector.broadcast %40 : vector<8x1xf32> to vector<8x128xf32>
    %42 = arith.mulf %41, %19 : vector<8x128xf32>
    %43 = arith.addf %42, %22 : vector<8x128xf32>
    %44 = vector.extract_strided_slice %23 {offsets = [0, 5], sizes = [8, 1], strides = [1, 1]} : vector<8x8xf32> to vector<8x1xf32>
    %45 = vector.broadcast %44 : vector<8x1xf32> to vector<8x128xf32>
    %46 = arith.mulf %45, %19 : vector<8x128xf32>
    %47 = arith.addf %46, %22 : vector<8x128xf32>
    %48 = vector.extract_strided_slice %23 {offsets = [0, 6], sizes = [8, 1], strides = [1, 1]} : vector<8x8xf32> to vector<8x1xf32>
    %49 = vector.broadcast %48 : vector<8x1xf32> to vector<8x128xf32>
    %50 = arith.mulf %49, %19 : vector<8x128xf32>
    %51 = arith.addf %50, %22 : vector<8x128xf32>
    %52 = vector.extract_strided_slice %23 {offsets = [0, 7], sizes = [8, 1], strides = [1, 1]} : vector<8x8xf32> to vector<8x1xf32>
    %53 = vector.broadcast %52 : vector<8x1xf32> to vector<8x128xf32>
    %54 = arith.mulf %53, %19 : vector<8x128xf32>
    %55 = arith.addf %54, %22 : vector<8x128xf32>
    %c8 = arith.constant 8 : index
    %c0_7 = arith.constant 0 : index
    %56 = vector.load %arg1[%c8, %c0_7] : memref<112x128xf32, #tpu.memory_space<vmem>>, vector<32x128xf32>
    %cst_8 = arith.constant 0.000000e+00 : f32
    %57 = vector.broadcast %cst_8 : f32 to vector<8x32xf32>
    %cst_9 = arith.constant 0.000000e+00 : f32
    %58 = vector.broadcast %cst_9 : f32 to vector<8x32xf32>
    %cst_10 = arith.constant dense<0.000000e+00> : vector<8x128xf32>
    %59 = tpu.matmul %57, %56, %cst_10 {dimension_numbers = #tpu.dot_dimension_numbers<[1], [0], [0], [1], [0, 0, 1, 1], [], []>} : vector<8x32xf32>, vector<32x128xf32>, vector<8x128xf32> -> vector<8x128xf32>
    %60 = arith.addf %27, %59 : vector<8x128xf32>
    %61 = arith.mulf %60, %11 : vector<8x128xf32>
    %62 = math.tanh %61 : vector<8x128xf32>
    %63 = arith.mulf %62, %11 : vector<8x128xf32>
    %64 = arith.addf %63, %16 : vector<8x128xf32>
    %65 = vector.extract_strided_slice %64 {offsets = [0, 0], sizes = [8, 32], strides = [1, 1]} : vector<8x128xf32> to vector<8x32xf32>
    %66 = vector.extract_strided_slice %64 {offsets = [0, 32], sizes = [8, 32], strides = [1, 1]} : vector<8x128xf32> to vector<8x32xf32>
    %67 = vector.extract_strided_slice %64 {offsets = [0, 64], sizes = [8, 32], strides = [1, 1]} : vector<8x128xf32> to vector<8x32xf32>
    %68 = vector.extract_strided_slice %64 {offsets = [0, 96], sizes = [8, 32], strides = [1, 1]} : vector<8x128xf32> to vector<8x32xf32>
    %69 = arith.mulf %66, %58 : vector<8x32xf32>
    %70 = arith.mulf %65, %67 : vector<8x32xf32>
    %71 = arith.addf %69, %70 : vector<8x32xf32>
    %72 = math.tanh %71 : vector<8x32xf32>
    %73 = arith.mulf %68, %72 : vector<8x32xf32>
    %c0_11 = arith.constant 0 : index
    %c0_12 = arith.constant 0 : index
    %74 = vector.load %arg3[%c0_11, %c0_12] : memref<64x32xf32, #tpu.memory_space<vmem>>, vector<8x32xf32>
    tpu.vector_store %arg3[%c0_11, %c0_12], %73 {strides = array<i32>} : memref<64x32xf32, #tpu.memory_space<vmem>>, vector<8x32xf32>,
    %cst_13 = arith.constant dense<0.000000e+00> : vector<8x128xf32>
    %75 = tpu.matmul %73, %56, %cst_13 {dimension_numbers = #tpu.dot_dimension_numbers<[1], [0], [0], [1], [0, 0, 1, 1], [], []>} : vector<8x32xf32>, vector<32x128xf32>, vector<8x128xf32> -> vector<8x128xf32>
    %76 = arith.addf %31, %75 : vector<8x128xf32>
    %77 = arith.mulf %76, %11 : vector<8x128xf32>
    %78 = math.tanh %77 : vector<8x128xf32>
    %79 = arith.mulf %78, %11 : vector<8x128xf32>
    %80 = arith.addf %79, %16 : vector<8x128xf32>
    %81 = vector.extract_strided_slice %80 {offsets = [0, 0], sizes = [8, 32], strides = [1, 1]} : vector<8x128xf32> to vector<8x32xf32>
    %82 = vector.extract_strided_slice %80 {offsets = [0, 32], sizes = [8, 32], strides = [1, 1]} : vector<8x128xf32> to vector<8x32xf32>
    %83 = vector.extract_strided_slice %80 {offsets = [0, 64], sizes = [8, 32], strides = [1, 1]} : vector<8x128xf32> to vector<8x32xf32>
    %84 = vector.extract_strided_slice %80 {offsets = [0, 96], sizes = [8, 32], strides = [1, 1]} : vector<8x128xf32> to vector<8x32xf32>
    %85 = arith.mulf %82, %71 : vector<8x32xf32>
    %86 = arith.mulf %81, %83 : vector<8x32xf32>
    %87 = arith.addf %85, %86 : vector<8x32xf32>
    %88 = math.tanh %87 : vector<8x32xf32>
    %89 = arith.mulf %84, %88 : vector<8x32xf32>
    %c8_14 = arith.constant 8 : index
    %c0_15 = arith.constant 0 : index
    %90 = vector.load %arg3[%c8_14, %c0_15] : memref<64x32xf32, #tpu.memory_space<vmem>>, vector<8x32xf32>
    tpu.vector_store %arg3[%c8_14, %c0_15], %89 {strides = array<i32>} : memref<64x32xf32, #tpu.memory_space<vmem>>, vector<8x32xf32>,
    %cst_16 = arith.constant dense<0.000000e+00> : vector<8x128xf32>
    %91 = tpu.matmul %89, %56, %cst_16 {dimension_numbers = #tpu.dot_dimension_numbers<[1], [0], [0], [1], [0, 0, 1, 1], [], []>} : vector<8x32xf32>, vector<32x128xf32>, vector<8x128xf32> -> vector<8x128xf32>
    %92 = arith.addf %35, %91 : vector<8x128xf32>
    %93 = arith.mulf %92, %11 : vector<8x128xf32>
    %94 = math.tanh %93 : vector<8x128xf32>
    %95 = arith.mulf %94, %11 : vector<8x128xf32>
    %96 = arith.addf %95, %16 : vector<8x128xf32>
    %97 = vector.extract_strided_slice %96 {offsets = [0, 0], sizes = [8, 32], strides = [1, 1]} : vector<8x128xf32> to vector<8x32xf32>
    %98 = vector.extract_strided_slice %96 {offsets = [0, 32], sizes = [8, 32], strides = [1, 1]} : vector<8x128xf32> to vector<8x32xf32>
    %99 = vector.extract_strided_slice %96 {offsets = [0, 64], sizes = [8, 32], strides = [1, 1]} : vector<8x128xf32> to vector<8x32xf32>
    %100 = vector.extract_strided_slice %96 {offsets = [0, 96], sizes = [8, 32], strides = [1, 1]} : vector<8x128xf32> to vector<8x32xf32>
    %101 = arith.mulf %98, %87 : vector<8x32xf32>
    %102 = arith.mulf %97, %99 : vector<8x32xf32>
    %103 = arith.addf %101, %102 : vector<8x32xf32>
    %104 = math.tanh %103 : vector<8x32xf32>
    %105 = arith.mulf %100, %104 : vector<8x32xf32>
    %c16 = arith.constant 16 : index
    %c0_17 = arith.constant 0 : index
    %106 = vector.load %arg3[%c16, %c0_17] : memref<64x32xf32, #tpu.memory_space<vmem>>, vector<8x32xf32>
    tpu.vector_store %arg3[%c16, %c0_17], %105 {strides = array<i32>} : memref<64x32xf32, #tpu.memory_space<vmem>>, vector<8x32xf32>,
    %cst_18 = arith.constant dense<0.000000e+00> : vector<8x128xf32>
    %107 = tpu.matmul %105, %56, %cst_18 {dimension_numbers = #tpu.dot_dimension_numbers<[1], [0], [0], [1], [0, 0, 1, 1], [], []>} : vector<8x32xf32>, vector<32x128xf32>, vector<8x128xf32> -> vector<8x128xf32>
    %108 = arith.addf %39, %107 : vector<8x128xf32>
    %109 = arith.mulf %108, %11 : vector<8x128xf32>
    %110 = math.tanh %109 : vector<8x128xf32>
    %111 = arith.mulf %110, %11 : vector<8x128xf32>
    %112 = arith.addf %111, %16 : vector<8x128xf32>
    %113 = vector.extract_strided_slice %112 {offsets = [0, 0], sizes = [8, 32], strides = [1, 1]} : vector<8x128xf32> to vector<8x32xf32>
    %114 = vector.extract_strided_slice %112 {offsets = [0, 32], sizes = [8, 32], strides = [1, 1]} : vector<8x128xf32> to vector<8x32xf32>
    %115 = vector.extract_strided_slice %112 {offsets = [0, 64], sizes = [8, 32], strides = [1, 1]} : vector<8x128xf32> to vector<8x32xf32>
    %116 = vector.extract_strided_slice %112 {offsets = [0, 96], sizes = [8, 32], strides = [1, 1]} : vector<8x128xf32> to vector<8x32xf32>
    %117 = arith.mulf %114, %103 : vector<8x32xf32>
    %118 = arith.mulf %113, %115 : vector<8x32xf32>
    %119 = arith.addf %117, %118 : vector<8x32xf32>
    %120 = math.tanh %119 : vector<8x32xf32>
    %121 = arith.mulf %116, %120 : vector<8x32xf32>
    %c24 = arith.constant 24 : index
    %c0_19 = arith.constant 0 : index
    %122 = vector.load %arg3[%c24, %c0_19] : memref<64x32xf32, #tpu.memory_space<vmem>>, vector<8x32xf32>
    tpu.vector_store %arg3[%c24, %c0_19], %121 {strides = array<i32>} : memref<64x32xf32, #tpu.memory_space<vmem>>, vector<8x32xf32>,
    %cst_20 = arith.constant dense<0.000000e+00> : vector<8x128xf32>
    %123 = tpu.matmul %121, %56, %cst_20 {dimension_numbers = #tpu.dot_dimension_numbers<[1], [0], [0], [1], [0, 0, 1, 1], [], []>} : vector<8x32xf32>, vector<32x128xf32>, vector<8x128xf32> -> vector<8x128xf32>
    %124 = arith.addf %43, %123 : vector<8x128xf32>
    %125 = arith.mulf %124, %11 : vector<8x128xf32>
    %126 = math.tanh %125 : vector<8x128xf32>
    %127 = arith.mulf %126, %11 : vector<8x128xf32>
    %128 = arith.addf %127, %16 : vector<8x128xf32>
    %129 = vector.extract_strided_slice %128 {offsets = [0, 0], sizes = [8, 32], strides = [1, 1]} : vector<8x128xf32> to vector<8x32xf32>
    %130 = vector.extract_strided_slice %128 {offsets = [0, 32], sizes = [8, 32], strides = [1, 1]} : vector<8x128xf32> to vector<8x32xf32>
    %131 = vector.extract_strided_slice %128 {offsets = [0, 64], sizes = [8, 32], strides = [1, 1]} : vector<8x128xf32> to vector<8x32xf32>
    %132 = vector.extract_strided_slice %128 {offsets = [0, 96], sizes = [8, 32], strides = [1, 1]} : vector<8x128xf32> to vector<8x32xf32>
    %133 = arith.mulf %130, %119 : vector<8x32xf32>
    %134 = arith.mulf %129, %131 : vector<8x32xf32>
    %135 = arith.addf %133, %134 : vector<8x32xf32>
    %136 = math.tanh %135 : vector<8x32xf32>
    %137 = arith.mulf %132, %136 : vector<8x32xf32>
    %c32 = arith.constant 32 : index
    %c0_21 = arith.constant 0 : index
    %138 = vector.load %arg3[%c32, %c0_21] : memref<64x32xf32, #tpu.memory_space<vmem>>, vector<8x32xf32>
    tpu.vector_store %arg3[%c32, %c0_21], %137 {strides = array<i32>} : memref<64x32xf32, #tpu.memory_space<vmem>>, vector<8x32xf32>,
    %cst_22 = arith.constant dense<0.000000e+00> : vector<8x128xf32>
    %139 = tpu.matmul %137, %56, %cst_22 {dimension_numbers = #tpu.dot_dimension_numbers<[1], [0], [0], [1], [0, 0, 1, 1], [], []>} : vector<8x32xf32>, vector<32x128xf32>, vector<8x128xf32> -> vector<8x128xf32>
    %140 = arith.addf %47, %139 : vector<8x128xf32>
    %141 = arith.mulf %140, %11 : vector<8x128xf32>
    %142 = math.tanh %141 : vector<8x128xf32>
    %143 = arith.mulf %142, %11 : vector<8x128xf32>
    %144 = arith.addf %143, %16 : vector<8x128xf32>
    %145 = vector.extract_strided_slice %144 {offsets = [0, 0], sizes = [8, 32], strides = [1, 1]} : vector<8x128xf32> to vector<8x32xf32>
    %146 = vector.extract_strided_slice %144 {offsets = [0, 32], sizes = [8, 32], strides = [1, 1]} : vector<8x128xf32> to vector<8x32xf32>
    %147 = vector.extract_strided_slice %144 {offsets = [0, 64], sizes = [8, 32], strides = [1, 1]} : vector<8x128xf32> to vector<8x32xf32>
    %148 = vector.extract_strided_slice %144 {offsets = [0, 96], sizes = [8, 32], strides = [1, 1]} : vector<8x128xf32> to vector<8x32xf32>
    %149 = arith.mulf %146, %135 : vector<8x32xf32>
    %150 = arith.mulf %145, %147 : vector<8x32xf32>
    %151 = arith.addf %149, %150 : vector<8x32xf32>
    %152 = math.tanh %151 : vector<8x32xf32>
    %153 = arith.mulf %148, %152 : vector<8x32xf32>
    %c40 = arith.constant 40 : index
    %c0_23 = arith.constant 0 : index
    %154 = vector.load %arg3[%c40, %c0_23] : memref<64x32xf32, #tpu.memory_space<vmem>>, vector<8x32xf32>
    tpu.vector_store %arg3[%c40, %c0_23], %153 {strides = array<i32>} : memref<64x32xf32, #tpu.memory_space<vmem>>, vector<8x32xf32>,
    %cst_24 = arith.constant dense<0.000000e+00> : vector<8x128xf32>
    %155 = tpu.matmul %153, %56, %cst_24 {dimension_numbers = #tpu.dot_dimension_numbers<[1], [0], [0], [1], [0, 0, 1, 1], [], []>} : vector<8x32xf32>, vector<32x128xf32>, vector<8x128xf32> -> vector<8x128xf32>
    %156 = arith.addf %51, %155 : vector<8x128xf32>
    %157 = arith.mulf %156, %11 : vector<8x128xf32>
    %158 = math.tanh %157 : vector<8x128xf32>
    %159 = arith.mulf %158, %11 : vector<8x128xf32>
    %160 = arith.addf %159, %16 : vector<8x128xf32>
    %161 = vector.extract_strided_slice %160 {offsets = [0, 0], sizes = [8, 32], strides = [1, 1]} : vector<8x128xf32> to vector<8x32xf32>
    %162 = vector.extract_strided_slice %160 {offsets = [0, 32], sizes = [8, 32], strides = [1, 1]} : vector<8x128xf32> to vector<8x32xf32>
    %163 = vector.extract_strided_slice %160 {offsets = [0, 64], sizes = [8, 32], strides = [1, 1]} : vector<8x128xf32> to vector<8x32xf32>
    %164 = vector.extract_strided_slice %160 {offsets = [0, 96], sizes = [8, 32], strides = [1, 1]} : vector<8x128xf32> to vector<8x32xf32>
    %165 = arith.mulf %162, %151 : vector<8x32xf32>
    %166 = arith.mulf %161, %163 : vector<8x32xf32>
    %167 = arith.addf %165, %166 : vector<8x32xf32>
    %168 = math.tanh %167 : vector<8x32xf32>
    %169 = arith.mulf %164, %168 : vector<8x32xf32>
    %c48 = arith.constant 48 : index
    %c0_25 = arith.constant 0 : index
    %170 = vector.load %arg3[%c48, %c0_25] : memref<64x32xf32, #tpu.memory_space<vmem>>, vector<8x32xf32>
    tpu.vector_store %arg3[%c48, %c0_25], %169 {strides = array<i32>} : memref<64x32xf32, #tpu.memory_space<vmem>>, vector<8x32xf32>,
    %cst_26 = arith.constant dense<0.000000e+00> : vector<8x128xf32>
    %171 = tpu.matmul %169, %56, %cst_26 {dimension_numbers = #tpu.dot_dimension_numbers<[1], [0], [0], [1], [0, 0, 1, 1], [], []>} : vector<8x32xf32>, vector<32x128xf32>, vector<8x128xf32> -> vector<8x128xf32>
    %172 = arith.addf %55, %171 : vector<8x128xf32>
    %173 = arith.mulf %172, %11 : vector<8x128xf32>
    %174 = math.tanh %173 : vector<8x128xf32>
    %175 = arith.mulf %174, %11 : vector<8x128xf32>
    %176 = arith.addf %175, %16 : vector<8x128xf32>
    %177 = vector.extract_strided_slice %176 {offsets = [0, 0], sizes = [8, 32], strides = [1, 1]} : vector<8x128xf32> to vector<8x32xf32>
    %178 = vector.extract_strided_slice %176 {offsets = [0, 32], sizes = [8, 32], strides = [1, 1]} : vector<8x128xf32> to vector<8x32xf32>
    %179 = vector.extract_strided_slice %176 {offsets = [0, 64], sizes = [8, 32], strides = [1, 1]} : vector<8x128xf32> to vector<8x32xf32>
    %180 = vector.extract_strided_slice %176 {offsets = [0, 96], sizes = [8, 32], strides = [1, 1]} : vector<8x128xf32> to vector<8x32xf32>
    %181 = arith.mulf %178, %167 : vector<8x32xf32>
    %182 = arith.mulf %177, %179 : vector<8x32xf32>
    %183 = arith.addf %181, %182 : vector<8x32xf32>
    %184 = math.tanh %183 : vector<8x32xf32>
    %185 = arith.mulf %180, %184 : vector<8x32xf32>
    %c56 = arith.constant 56 : index
    %c0_27 = arith.constant 0 : index
    %186 = vector.load %arg3[%c56, %c0_27] : memref<64x32xf32, #tpu.memory_space<vmem>>, vector<8x32xf32>
    tpu.vector_store %arg3[%c56, %c0_27], %185 {strides = array<i32>} : memref<64x32xf32, #tpu.memory_space<vmem>>, vector<8x32xf32>,
    %c72 = arith.constant 72 : index
    %c0_28 = arith.constant 0 : index
    %187 = vector.load %arg1[%c72, %c0_28] : memref<112x128xf32, #tpu.memory_space<vmem>>, vector<32x128xf32>
    %c2 = arith.constant 2 : index
    %c0_29 = arith.constant 0 : index
    %188 = vector.load %arg1[%c2, %c0_29] : memref<112x128xf32, #tpu.memory_space<vmem>>, vector<1x128xf32>
    %c0_30 = arith.constant 0 : index
    %c0_31 = arith.constant 0 : index
    %189 = vector.load %arg3[%c0_30, %c0_31] : memref<64x32xf32, #tpu.memory_space<vmem>>, vector<64x32xf32>
    %cst_32 = arith.constant dense<0.000000e+00> : vector<64x128xf32>
    %190 = tpu.matmul %189, %187, %cst_32 {dimension_numbers = #tpu.dot_dimension_numbers<[1], [0], [0], [1], [0, 0, 1, 1], [], []>} : vector<64x32xf32>, vector<32x128xf32>, vector<64x128xf32> -> vector<64x128xf32>
    %191 = vector.broadcast %188 : vector<1x128xf32> to vector<64x128xf32>
    %192 = arith.addf %190, %191 : vector<64x128xf32>
    %193 = vector.extract_strided_slice %192 {offsets = [0, 0], sizes = [8, 128], strides = [1, 1]} : vector<64x128xf32> to vector<8x128xf32>
    %194 = vector.extract_strided_slice %192 {offsets = [8, 0], sizes = [8, 128], strides = [1, 1]} : vector<64x128xf32> to vector<8x128xf32>
    %195 = vector.extract_strided_slice %192 {offsets = [16, 0], sizes = [8, 128], strides = [1, 1]} : vector<64x128xf32> to vector<8x128xf32>
    %196 = vector.extract_strided_slice %192 {offsets = [24, 0], sizes = [8, 128], strides = [1, 1]} : vector<64x128xf32> to vector<8x128xf32>
    %197 = vector.extract_strided_slice %192 {offsets = [32, 0], sizes = [8, 128], strides = [1, 1]} : vector<64x128xf32> to vector<8x128xf32>
    %198 = vector.extract_strided_slice %192 {offsets = [40, 0], sizes = [8, 128], strides = [1, 1]} : vector<64x128xf32> to vector<8x128xf32>
    %199 = vector.extract_strided_slice %192 {offsets = [48, 0], sizes = [8, 128], strides = [1, 1]} : vector<64x128xf32> to vector<8x128xf32>
    %200 = vector.extract_strided_slice %192 {offsets = [56, 0], sizes = [8, 128], strides = [1, 1]} : vector<64x128xf32> to vector<8x128xf32>
    %c40_33 = arith.constant 40 : index
    %c0_34 = arith.constant 0 : index
    %201 = vector.load %arg1[%c40_33, %c0_34] : memref<112x128xf32, #tpu.memory_space<vmem>>, vector<32x128xf32>
    %cst_35 = arith.constant 0.000000e+00 : f32
    %202 = vector.broadcast %cst_35 : f32 to vector<8x32xf32>
    %cst_36 = arith.constant 0.000000e+00 : f32
    %203 = vector.broadcast %cst_36 : f32 to vector<8x32xf32>
    %cst_37 = arith.constant dense<0.000000e+00> : vector<8x128xf32>
    %204 = tpu.matmul %202, %201, %cst_37 {dimension_numbers = #tpu.dot_dimension_numbers<[1], [0], [0], [1], [0, 0, 1, 1], [], []>} : vector<8x32xf32>, vector<32x128xf32>, vector<8x128xf32> -> vector<8x128xf32>
    %205 = arith.addf %193, %204 : vector<8x128xf32>
    %206 = arith.mulf %205, %11 : vector<8x128xf32>
    %207 = math.tanh %206 : vector<8x128xf32>
    %208 = arith.mulf %207, %11 : vector<8x128xf32>
    %209 = arith.addf %208, %16 : vector<8x128xf32>
    %210 = vector.extract_strided_slice %209 {offsets = [0, 0], sizes = [8, 32], strides = [1, 1]} : vector<8x128xf32> to vector<8x32xf32>
    %211 = vector.extract_strided_slice %209 {offsets = [0, 32], sizes = [8, 32], strides = [1, 1]} : vector<8x128xf32> to vector<8x32xf32>
    %212 = vector.extract_strided_slice %209 {offsets = [0, 64], sizes = [8, 32], strides = [1, 1]} : vector<8x128xf32> to vector<8x32xf32>
    %213 = vector.extract_strided_slice %209 {offsets = [0, 96], sizes = [8, 32], strides = [1, 1]} : vector<8x128xf32> to vector<8x32xf32>
    %214 = arith.mulf %211, %203 : vector<8x32xf32>
    %215 = arith.mulf %210, %212 : vector<8x32xf32>
    %216 = arith.addf %214, %215 : vector<8x32xf32>
    %217 = math.tanh %216 : vector<8x32xf32>
    %218 = arith.mulf %213, %217 : vector<8x32xf32>
    %cst_38 = arith.constant dense<0.000000e+00> : vector<8x128xf32>
    %219 = tpu.matmul %218, %201, %cst_38 {dimension_numbers = #tpu.dot_dimension_numbers<[1], [0], [0], [1], [0, 0, 1, 1], [], []>} : vector<8x32xf32>, vector<32x128xf32>, vector<8x128xf32> -> vector<8x128xf32>
    %220 = arith.addf %194, %219 : vector<8x128xf32>
    %221 = arith.mulf %220, %11 : vector<8x128xf32>
    %222 = math.tanh %221 : vector<8x128xf32>
    %223 = arith.mulf %222, %11 : vector<8x128xf32>
    %224 = arith.addf %223, %16 : vector<8x128xf32>
    %225 = vector.extract_strided_slice %224 {offsets = [0, 0], sizes = [8, 32], strides = [1, 1]} : vector<8x128xf32> to vector<8x32xf32>
    %226 = vector.extract_strided_slice %224 {offsets = [0, 32], sizes = [8, 32], strides = [1, 1]} : vector<8x128xf32> to vector<8x32xf32>
    %227 = vector.extract_strided_slice %224 {offsets = [0, 64], sizes = [8, 32], strides = [1, 1]} : vector<8x128xf32> to vector<8x32xf32>
    %228 = vector.extract_strided_slice %224 {offsets = [0, 96], sizes = [8, 32], strides = [1, 1]} : vector<8x128xf32> to vector<8x32xf32>
    %229 = arith.mulf %226, %216 : vector<8x32xf32>
    %230 = arith.mulf %225, %227 : vector<8x32xf32>
    %231 = arith.addf %229, %230 : vector<8x32xf32>
    %232 = math.tanh %231 : vector<8x32xf32>
    %233 = arith.mulf %228, %232 : vector<8x32xf32>
    %cst_39 = arith.constant dense<0.000000e+00> : vector<8x128xf32>
    %234 = tpu.matmul %233, %201, %cst_39 {dimension_numbers = #tpu.dot_dimension_numbers<[1], [0], [0], [1], [0, 0, 1, 1], [], []>} : vector<8x32xf32>, vector<32x128xf32>, vector<8x128xf32> -> vector<8x128xf32>
    %235 = arith.addf %195, %234 : vector<8x128xf32>
    %236 = arith.mulf %235, %11 : vector<8x128xf32>
    %237 = math.tanh %236 : vector<8x128xf32>
    %238 = arith.mulf %237, %11 : vector<8x128xf32>
    %239 = arith.addf %238, %16 : vector<8x128xf32>
    %240 = vector.extract_strided_slice %239 {offsets = [0, 0], sizes = [8, 32], strides = [1, 1]} : vector<8x128xf32> to vector<8x32xf32>
    %241 = vector.extract_strided_slice %239 {offsets = [0, 32], sizes = [8, 32], strides = [1, 1]} : vector<8x128xf32> to vector<8x32xf32>
    %242 = vector.extract_strided_slice %239 {offsets = [0, 64], sizes = [8, 32], strides = [1, 1]} : vector<8x128xf32> to vector<8x32xf32>
    %243 = vector.extract_strided_slice %239 {offsets = [0, 96], sizes = [8, 32], strides = [1, 1]} : vector<8x128xf32> to vector<8x32xf32>
    %244 = arith.mulf %241, %231 : vector<8x32xf32>
    %245 = arith.mulf %240, %242 : vector<8x32xf32>
    %246 = arith.addf %244, %245 : vector<8x32xf32>
    %247 = math.tanh %246 : vector<8x32xf32>
    %248 = arith.mulf %243, %247 : vector<8x32xf32>
    %cst_40 = arith.constant dense<0.000000e+00> : vector<8x128xf32>
    %249 = tpu.matmul %248, %201, %cst_40 {dimension_numbers = #tpu.dot_dimension_numbers<[1], [0], [0], [1], [0, 0, 1, 1], [], []>} : vector<8x32xf32>, vector<32x128xf32>, vector<8x128xf32> -> vector<8x128xf32>
    %250 = arith.addf %196, %249 : vector<8x128xf32>
    %251 = arith.mulf %250, %11 : vector<8x128xf32>
    %252 = math.tanh %251 : vector<8x128xf32>
    %253 = arith.mulf %252, %11 : vector<8x128xf32>
    %254 = arith.addf %253, %16 : vector<8x128xf32>
    %255 = vector.extract_strided_slice %254 {offsets = [0, 0], sizes = [8, 32], strides = [1, 1]} : vector<8x128xf32> to vector<8x32xf32>
    %256 = vector.extract_strided_slice %254 {offsets = [0, 32], sizes = [8, 32], strides = [1, 1]} : vector<8x128xf32> to vector<8x32xf32>
    %257 = vector.extract_strided_slice %254 {offsets = [0, 64], sizes = [8, 32], strides = [1, 1]} : vector<8x128xf32> to vector<8x32xf32>
    %258 = vector.extract_strided_slice %254 {offsets = [0, 96], sizes = [8, 32], strides = [1, 1]} : vector<8x128xf32> to vector<8x32xf32>
    %259 = arith.mulf %256, %246 : vector<8x32xf32>
    %260 = arith.mulf %255, %257 : vector<8x32xf32>
    %261 = arith.addf %259, %260 : vector<8x32xf32>
    %262 = math.tanh %261 : vector<8x32xf32>
    %263 = arith.mulf %258, %262 : vector<8x32xf32>
    %cst_41 = arith.constant dense<0.000000e+00> : vector<8x128xf32>
    %264 = tpu.matmul %263, %201, %cst_41 {dimension_numbers = #tpu.dot_dimension_numbers<[1], [0], [0], [1], [0, 0, 1, 1], [], []>} : vector<8x32xf32>, vector<32x128xf32>, vector<8x128xf32> -> vector<8x128xf32>
    %265 = arith.addf %197, %264 : vector<8x128xf32>
    %266 = arith.mulf %265, %11 : vector<8x128xf32>
    %267 = math.tanh %266 : vector<8x128xf32>
    %268 = arith.mulf %267, %11 : vector<8x128xf32>
    %269 = arith.addf %268, %16 : vector<8x128xf32>
    %270 = vector.extract_strided_slice %269 {offsets = [0, 0], sizes = [8, 32], strides = [1, 1]} : vector<8x128xf32> to vector<8x32xf32>
    %271 = vector.extract_strided_slice %269 {offsets = [0, 32], sizes = [8, 32], strides = [1, 1]} : vector<8x128xf32> to vector<8x32xf32>
    %272 = vector.extract_strided_slice %269 {offsets = [0, 64], sizes = [8, 32], strides = [1, 1]} : vector<8x128xf32> to vector<8x32xf32>
    %273 = vector.extract_strided_slice %269 {offsets = [0, 96], sizes = [8, 32], strides = [1, 1]} : vector<8x128xf32> to vector<8x32xf32>
    %274 = arith.mulf %271, %261 : vector<8x32xf32>
    %275 = arith.mulf %270, %272 : vector<8x32xf32>
    %276 = arith.addf %274, %275 : vector<8x32xf32>
    %277 = math.tanh %276 : vector<8x32xf32>
    %278 = arith.mulf %273, %277 : vector<8x32xf32>
    %cst_42 = arith.constant dense<0.000000e+00> : vector<8x128xf32>
    %279 = tpu.matmul %278, %201, %cst_42 {dimension_numbers = #tpu.dot_dimension_numbers<[1], [0], [0], [1], [0, 0, 1, 1], [], []>} : vector<8x32xf32>, vector<32x128xf32>, vector<8x128xf32> -> vector<8x128xf32>
    %280 = arith.addf %198, %279 : vector<8x128xf32>
    %281 = arith.mulf %280, %11 : vector<8x128xf32>
    %282 = math.tanh %281 : vector<8x128xf32>
    %283 = arith.mulf %282, %11 : vector<8x128xf32>
    %284 = arith.addf %283, %16 : vector<8x128xf32>
    %285 = vector.extract_strided_slice %284 {offsets = [0, 0], sizes = [8, 32], strides = [1, 1]} : vector<8x128xf32> to vector<8x32xf32>
    %286 = vector.extract_strided_slice %284 {offsets = [0, 32], sizes = [8, 32], strides = [1, 1]} : vector<8x128xf32> to vector<8x32xf32>
    %287 = vector.extract_strided_slice %284 {offsets = [0, 64], sizes = [8, 32], strides = [1, 1]} : vector<8x128xf32> to vector<8x32xf32>
    %288 = vector.extract_strided_slice %284 {offsets = [0, 96], sizes = [8, 32], strides = [1, 1]} : vector<8x128xf32> to vector<8x32xf32>
    %289 = arith.mulf %286, %276 : vector<8x32xf32>
    %290 = arith.mulf %285, %287 : vector<8x32xf32>
    %291 = arith.addf %289, %290 : vector<8x32xf32>
    %292 = math.tanh %291 : vector<8x32xf32>
    %293 = arith.mulf %288, %292 : vector<8x32xf32>
    %cst_43 = arith.constant dense<0.000000e+00> : vector<8x128xf32>
    %294 = tpu.matmul %293, %201, %cst_43 {dimension_numbers = #tpu.dot_dimension_numbers<[1], [0], [0], [1], [0, 0, 1, 1], [], []>} : vector<8x32xf32>, vector<32x128xf32>, vector<8x128xf32> -> vector<8x128xf32>
    %295 = arith.addf %199, %294 : vector<8x128xf32>
    %296 = arith.mulf %295, %11 : vector<8x128xf32>
    %297 = math.tanh %296 : vector<8x128xf32>
    %298 = arith.mulf %297, %11 : vector<8x128xf32>
    %299 = arith.addf %298, %16 : vector<8x128xf32>
    %300 = vector.extract_strided_slice %299 {offsets = [0, 0], sizes = [8, 32], strides = [1, 1]} : vector<8x128xf32> to vector<8x32xf32>
    %301 = vector.extract_strided_slice %299 {offsets = [0, 32], sizes = [8, 32], strides = [1, 1]} : vector<8x128xf32> to vector<8x32xf32>
    %302 = vector.extract_strided_slice %299 {offsets = [0, 64], sizes = [8, 32], strides = [1, 1]} : vector<8x128xf32> to vector<8x32xf32>
    %303 = vector.extract_strided_slice %299 {offsets = [0, 96], sizes = [8, 32], strides = [1, 1]} : vector<8x128xf32> to vector<8x32xf32>
    %304 = arith.mulf %301, %291 : vector<8x32xf32>
    %305 = arith.mulf %300, %302 : vector<8x32xf32>
    %306 = arith.addf %304, %305 : vector<8x32xf32>
    %307 = math.tanh %306 : vector<8x32xf32>
    %308 = arith.mulf %303, %307 : vector<8x32xf32>
    %cst_44 = arith.constant dense<0.000000e+00> : vector<8x128xf32>
    %309 = tpu.matmul %308, %201, %cst_44 {dimension_numbers = #tpu.dot_dimension_numbers<[1], [0], [0], [1], [0, 0, 1, 1], [], []>} : vector<8x32xf32>, vector<32x128xf32>, vector<8x128xf32> -> vector<8x128xf32>
    %310 = arith.addf %200, %309 : vector<8x128xf32>
    %311 = arith.mulf %310, %11 : vector<8x128xf32>
    %312 = math.tanh %311 : vector<8x128xf32>
    %313 = arith.mulf %312, %11 : vector<8x128xf32>
    %314 = arith.addf %313, %16 : vector<8x128xf32>
    %315 = vector.extract_strided_slice %314 {offsets = [0, 0], sizes = [8, 32], strides = [1, 1]} : vector<8x128xf32> to vector<8x32xf32>
    %316 = vector.extract_strided_slice %314 {offsets = [0, 32], sizes = [8, 32], strides = [1, 1]} : vector<8x128xf32> to vector<8x32xf32>
    %317 = vector.extract_strided_slice %314 {offsets = [0, 64], sizes = [8, 32], strides = [1, 1]} : vector<8x128xf32> to vector<8x32xf32>
    %318 = vector.extract_strided_slice %314 {offsets = [0, 96], sizes = [8, 32], strides = [1, 1]} : vector<8x128xf32> to vector<8x32xf32>
    %319 = arith.mulf %316, %306 : vector<8x32xf32>
    %320 = arith.mulf %315, %317 : vector<8x32xf32>
    %321 = arith.addf %319, %320 : vector<8x32xf32>
    %322 = math.tanh %321 : vector<8x32xf32>
    %323 = arith.mulf %318, %322 : vector<8x32xf32>
    %c104 = arith.constant 104 : index
    %c0_45 = arith.constant 0 : index
    %324 = vector.load %arg1[%c104, %c0_45] : memref<112x128xf32, #tpu.memory_space<vmem>>, vector<2x128xf32>
    %325 = vector.extract_strided_slice %324 {offsets = [0, 0], sizes = [1, 32], strides = [1, 1]} : vector<2x128xf32> to vector<1x32xf32>
    %326 = vector.extract_strided_slice %324 {offsets = [1, 0], sizes = [1, 32], strides = [1, 1]} : vector<2x128xf32> to vector<1x32xf32>
    %327 = vector.extract_strided_slice %0 {offsets = [0, 8], sizes = [8, 1], strides = [1, 1]} : vector<8x10xf32> to vector<8x1xf32>
    %328 = arith.fptosi %327 : vector<8x1xf32> to vector<8x1xi32>
    %329 = vector.extract_strided_slice %0 {offsets = [0, 9], sizes = [8, 1], strides = [1, 1]} : vector<8x10xf32> to vector<8x1xf32>
    %330 = arith.fptosi %329 : vector<8x1xf32> to vector<8x1xi32>
    %331 = tpu.iota {dimensions = array<i32: 1>} : vector<8x32xi32>
    %332 = vector.broadcast %328 : vector<8x1xi32> to vector<8x32xi32>
    %333 = arith.cmpi eq, %331, %332 : vector<8x32xi32>
    %c8_i32 = arith.constant 8 : i32
    %334 = vector.broadcast %c8_i32 : i32 to vector<8x1xi32>
    %335 = arith.addi %330, %334 : vector<8x1xi32>
    %336 = vector.broadcast %335 : vector<8x1xi32> to vector<8x32xi32>
    %337 = arith.cmpi eq, %331, %336 : vector<8x32xi32>
    %338 = arith.ori %333, %337 : vector<8x32xi1>
    %339 = arith.extui %338 : vector<8x32xi1> to vector<8x32xi32>
    %340 = arith.sitofp %339 : vector<8x32xi32> to vector<8x32xf32>
    %341 = vector.broadcast %325 : vector<1x32xf32> to vector<8x32xf32>
    %342 = arith.mulf %323, %341 : vector<8x32xf32>
    %cst_46 = arith.constant dense<0.000000e+00> : vector<8xf32>
    %343 = vector.multi_reduction <add>, %342, %cst_46 [1] : vector<8x32xf32> to vector<8xf32>
    %344 = vector.shape_cast %343 : vector<8xf32> to vector<8x1xf32>
    %345 = vector.broadcast %326 : vector<1x32xf32> to vector<8x32xf32>
    %346 = arith.mulf %340, %345 : vector<8x32xf32>
    %cst_47 = arith.constant dense<0.000000e+00> : vector<8xf32>
    %347 = vector.multi_reduction <add>, %346, %cst_47 [1] : vector<8x32xf32> to vector<8xf32>
    %348 = vector.shape_cast %347 : vector<8xf32> to vector<8x1xf32>
    %349 = arith.addf %344, %348 : vector<8x1xf32>
    %c0_48 = arith.constant 0 : index
    %c0_49 = arith.constant 0 : index
    %350 = vector.load %arg2[%c0_48, %c0_49] : memref<8x1xf32, #tpu.memory_space<vmem>>, vector<8x1xf32>
    tpu.vector_store %arg2[%c0_48, %c0_49], %349 {strides = array<i32>} : memref<8x1xf32, #tpu.memory_space<vmem>>, vector<8x1xf32>,
    return
  }
}

</mosaic_0001>

<bundles_post_ra>
// kernel: _lambda_.1
= control target key start
LH: loop header
LB: loop body
LE: loop exit
PB: predicated region body
PF: predicated region fallthrough
CT: control target
= control target key end

     0   :  { %7 = vsyncpa [#allocation4], 0  ;;  %s2833_s0 = inlined_call_operand.hbm [shape: f32[8,10], index: 0, kind: input, shape index: {}]   ;;  %s2834_s1 = inlined_call_operand.hbm [shape: f32[112,128], index: 1, kind: input, shape index: {}]   ;;  %s2835_s2 = inlined_call_operand.vmem [shape: f32[8,1], index: 2, kind: output, shape index: {}]  }
   0x1   :  { %8 = vsyncpa [#allocation6], 0  ;;  %s2435_s9 = smov [#allocation3]   ;;  %s2436_s11 = smov [#allocation5]  }
   0x2   :  { %s15_s10 = sshll.u32 %s2435_s9, 4  ;;  %s24_s12 = sshll.u32 %s2436_s11, 4  ;;  %s16_s10 = int_to_ptr.vmem [resolvable:$true] %s15_s10  ;;  %s2471_s12 = int_to_ptr.vmem [resolvable:$true] %s24_s12 }
   0x3   :  { %s2387_s15 = scalar_lea.hbm %s2833_s0, 128 }
   0x4   :  { %p2388_p0 = scmp.ne.s32.totalorder %s2833_s0, %s2387_s15  ;;  %p2391_p1 = scmp.lt.u32.totalorder %s2387_s15, %s2833_s0 }
   0x6   :  { %p2393_p2 = pnand %p2391_p1, %p2388_p0 }
   0x8   :  { %2396 = shalt.err (!%p2393_p2)
}
   0x9   :  { %s2397_s20 = scalar_lea.vmem %s16_s10, 128  ;;  %p2402_p4 = scmp.lt.s32.totalorder %s16_s10, %s16_s10 }
   0xa   :  { %p2398_p3 = scmp.ne.s32.totalorder %s16_s10, %s2397_s20  ;;  %p2403_p5 = scmp.lt.s32.totalorder %s2397_s20, %s2397_s20 }
   0xc   :  { %p2404_p6 = por %p2403_p5, %p2402_p4 }
   0xe   :  { %p2405_p7 = pnand %p2404_p6, %p2398_p3 }
  0x10   :  { %2408 = shalt.err (!%p2405_p7)
}
  0x11   :  { %18 = dma.hbm_to_vmem [thread:$0]  %s2833_s0, 128, %s16_s10, [#allocation4]  }
  0x12   :  { %s2409_s25 = scalar_lea.hbm %s2834_s1, 1792 }
  0x13   :  { %p2410_p8 = scmp.ne.s32.totalorder %s2834_s1, %s2409_s25  ;;  %p2413_p9 = scmp.lt.u32.totalorder %s2409_s25, %s2834_s1 }
  0x15   :  { %p2415_p10 = pnand %p2413_p9, %p2410_p8 }
  0x17   :  { %2418 = shalt.err (!%p2415_p10)
}
  0x18   :  { %s2419_s30 = scalar_lea.vmem %s2471_s12, 1792  ;;  %p2424_p12 = scmp.lt.s32.totalorder %s2471_s12, %s2471_s12 }
  0x19   :  { %p2420_p11 = scmp.ne.s32.totalorder %s2471_s12, %s2419_s30  ;;  %p2425_p13 = scmp.lt.s32.totalorder %s2419_s30, %s2419_s30 }
  0x1b   :  { %p2426_p0 = por %p2425_p13, %p2424_p12 }
  0x1d   :  { %p2427_p1 = pnand %p2426_p0, %p2420_p11 }
  0x1f   :  { %2430 = shalt.err (!%p2427_p1)
}
  0x20   :  { %s2437_s0 = smov 128   ;;  %s2438_s3 = smov 8  }
  0x21   :  { %30 = dma.hbm_to_vmem [thread:$0]  %s2834_s1, 1792, %s2471_s12, [#allocation6], %s2437_s0, %s2437_s0, %s2438_s3  }
  0x22   :  { %2431 = dma.done.wait [#allocation4], 128  }
  0x23   :  { %2432 = vsyncadd [#allocation4], 4294967168 }
  0x24   :  { %2433 = dma.done.wait [#allocation6], 1792  }
  0x25   :  { %2434 = vsyncadd [#allocation6], 4294965504  ;;  %v2439_v0 = vmov 0.0|0.0   ;;  %vm2440_vm0 = vmmov 0   ;;  %v2441_v1 = vmov 0.0   ;;  %v2442_v2 = vmov 0  }
  0x26   :  { %2184 = vmatprep.subr.bf16.mxu0 %v2439_v0  ;;  %1996 = vmatprep.mubr.msk.f32.mxu0 %vm2440_vm0, %v2441_v1  ;;  %v104_v3 = vld [vmem:[#allocation5 + $0x8] sm:$0xff]  ;;  %v105_v4 = vld [vmem:[#allocation5 + $0x10] sm:$0xff]  ;;  %v106_v5 = vld [vmem:[#allocation5 + $0x18] sm:$0xff]  ;;  %v38_v10 = vlaneseq  ;;  %v2443_v17 = vmov 0.5   ;;  %s2444_s1 = smov 64   ;;  %s2445_s6 = smov 32  }
  0x27   :  { %2311 = vset.pattern.permute.xlu0 %v2442_v2  ;;  %2190 = vmatprep.subr.bf16.mxu1 %v2439_v0  ;;  %v2508_v6 = vpack.c.bf16 %v105_v4, %v104_v3  ;;  %v107_v7 = vld [vmem:[#allocation5 + $0x20] sm:$0xff]  ;;  %v2510_v8 = vld [vmem:[#allocation3] sm:$0xff]  ;;  %v2446_v33 = vmov 1   ;;  %vm108_vm4 = vcmask 261120   ;;  %v2447_v53 = vmov 2   ;;  %s2455_s7 = smov 96  }
  0x28   :  { %2007 = vmatprep.mubr.msk.f32.mxu1 %vm2440_vm0, %v2441_v1  ;;  %57 = vperm.xlu0 %2311, %v2510_v8   ;;  %v2514_v9 = vpack.c.bf16 %v107_v7, %v106_v5  ;;  %v2530_v11 = vld [vmem:[#allocation5] ss:$0 sm:$0xff]  ;;  %v2533_v13 = vand.u32 127, %v38_v10  ;;  %v2538_v15 = vld [vmem:[#allocation5 + $0x1] ss:$0 sm:$0xff]  ;;  %vm1862_vm8 = vcmask 7168  }
  0x29   :  { %2186 = vmatpush3.bf16.msra.mxu0 %v2508_v6  ;;  %2192 = vmatpush3.bf16.msra.mxu1 %v2508_v6 }
  0x2a   :  { %2187 = vmatprep.subr.bf16.mxu0 %v2439_v0  ;;  %2193 = vmatprep.subr.bf16.mxu1 %v2439_v0  ;;  %vm40_vm1 = vcmp.ge.s32.totalorder %v2533_v13, 64  ;;  %vm41_vm2 = vcmp.lt.s32.totalorder %v2533_v13, 96 }
  0x2b   :  { %vm42_vm3 = vmand %vm40_vm1, %vm41_vm2  ;;  %2312 = vset.pattern.permute.xlu1 %v2446_v33 }
  0x2c   :  { %v2541_v18 = vsel %vm42_vm3, 1.0, %v2443_v17  ;;  %v2544_v24 = vsel %vm42_vm3, 0.0, %v2443_v17  ;;  %2313 = vset.pattern.permute.xlu0 %v2447_v53 }
  0x2d   :  { %2189 = vmatpush3.bf16.msra.mxu0 %v2514_v9  ;;  %2195 = vmatpush3.bf16.msra.mxu1 %v2514_v9 }
  0x2e   :  { %2196 = vmatprep.subr.bf16.mxu0 %v2439_v0  ;;  %2202 = vmatprep.subr.bf16.mxu1 %v2439_v0 }
  0x30   :  { %1997 = vmatmul.mubr.f32.vlgmr.msra.gmra.mrb[0].mxu0 %v2441_v1 }
  0x31   :  { %2198 = vmatpush3.bf16.msra.mxu0 %v2508_v6  ;;  %2018 = vmatprep.mubr.msk.f32.mxu0 %vm2440_vm0, %v2441_v1 }
  0x32   :  { %2199 = vmatprep.subr.bf16.mxu0 %v2439_v0 }
  0x35   :  { %2201 = vmatpush3.bf16.msra.mxu0 %v2514_v9 }
  0x36   :  { %2208 = vmatprep.subr.bf16.mxu0 %v2439_v0 }
  0xa7   :  { %v58_v12 = vpop.permute.xlu0 %57 }
  0xa8   :  { %v60_v14 = vmul.f32 %v2530_v11, %v58_v12 }
  0xaa   :  { %v61_v16 = vadd.f32 %v2538_v15, %v60_v14 }
 0x103   :  { %v178_v19 = vpop.f32.mrb[0].mxu0 }
 0x104   :  { %v182_v20 = vadd.f32 %v178_v19, %v61_v16  ;;  %v1998_v21 = vpop.f32.mrb[1].mxu0  ;;  %v2448_v19 = vmov 3  }
 0x106   :  { %v183_v22 = vmul.f32 %v182_v20, %v2541_v18 }
 0x108   :  { %2322 = vtanh.f32 %v183_v22 }
 0x112   :  { %v2323_v23 = vpop.eup %2322 }
 0x113   :  { %v185_v25 = vmul.f32 %v2323_v23, %v2541_v18 }
 0x115   :  { %v186_v26 = vadd.f32 %v185_v25, %v2544_v24 }
 0x117   :  { %189 = vrot.lane.b32.xlu0 %v186_v26, %s2444_s1  ;;  %v187_v29 = vmul.f32 0.0, %v186_v26 }
 0x189   :  { %v190_v27 = vpop.permute.xlu0 %189 }
 0x18a   :  { %v192_v28 = vmul.f32 %v190_v27, %v186_v26 }
 0x18c   :  { %194 = vrot.lane.b32.xlu1 %v192_v28, %s2445_s6 }
 0x1fe   :  { %v195_v30 = vpop.permute.xlu1 %194 }
 0x1ff   :  { %v197_v31 = vadd.f32 %v195_v30, %v187_v29 }
 0x201   :  { %2324 = vtanh.f32 %v197_v31 }
 0x20b   :  { %v2325_v32 = vpop.eup %2324 }
 0x20c   :  { %200 = vrot.lane.b32.xlu1 %v2325_v32, %s2444_s1 }
 0x210   :  { %63 = vperm.xlu1 %2312, %v2510_v8  }
 0x27e   :  { %v201_v34 = vpop.permute.xlu1 %200 }
 0x27f   :  { %v203_v35 = vmul.f32 %v201_v34, %v186_v26 }
 0x281   :  { %205 = vrot.lane.b32.xlu0 %v203_v35, %s2445_s6 }
 0x28f   :  { %v64_v37 = vpop.permute.xlu1 %63 }
 0x290   :  { %v66_v38 = vmul.f32 %v2530_v11, %v64_v37 }
 0x292   :  { %v67_v39 = vadd.f32 %v2538_v15, %v66_v38 }
 0x2f3   :  { %v206_v36 = vpop.permute.xlu0 %205 }
 0x2f4   :  { %208 = vst.msk [vmem:[#allocation2] sm:$0xff] %vm108_vm4, %v206_v36  ;;  %2008 = vmatmul.mubr.msk.f32.vlgmr.msra.gmra.mrb[0].mxu1 %vm108_vm4, %v206_v36 }
 0x2f5   :  { %2204 = vmatpush3.bf16.msra.mxu1 %v2508_v6  ;;  %2029 = vmatprep.mubr.msk.f32.mxu1 %vm2440_vm0, %v2441_v1 }
 0x2f6   :  { %2205 = vmatprep.subr.bf16.mxu1 %v2439_v0 }
 0x2f9   :  { %2207 = vmatpush3.bf16.msra.mxu1 %v2514_v9 }
 0x2fa   :  { %2214 = vmatprep.subr.bf16.mxu1 %v2439_v0 }
 0x3c7   :  { %v277_v40 = vpop.f32.mrb[0].mxu1 }
 0x3c8   :  { %v281_v41 = vadd.f32 %v277_v40, %v67_v39  ;;  %v2009_v42 = vpop.f32.mrb[1].mxu1  ;;  %v2449_v40 = vmov 4  }
 0x3ca   :  { %v282_v43 = vmul.f32 %v281_v41, %v2541_v18 }
 0x3cc   :  { %2326 = vtanh.f32 %v282_v43 }
 0x3d6   :  { %v2327_v44 = vpop.eup %2326 }
 0x3d7   :  { %v284_v45 = vmul.f32 %v2327_v44, %v2541_v18 }
 0x3d9   :  { %v285_v46 = vadd.f32 %v284_v45, %v2544_v24 }
 0x3db   :  { %288 = vrot.lane.b32.xlu0 %v285_v46, %s2444_s1  ;;  %v286_v49 = vmul.f32 %v285_v46, %v197_v31 }
 0x44d   :  { %v289_v47 = vpop.permute.xlu0 %288 }
 0x44e   :  { %v291_v48 = vmul.f32 %v289_v47, %v285_v46 }
 0x450   :  { %293 = vrot.lane.b32.xlu1 %v291_v48, %s2445_s6 }
 0x4c2   :  { %v294_v50 = vpop.permute.xlu1 %293 }
 0x4c3   :  { %v296_v51 = vadd.f32 %v294_v50, %v286_v49 }
 0x4c5   :  { %2328 = vtanh.f32 %v296_v51 }
 0x4cf   :  { %v2329_v52 = vpop.eup %2328 }
 0x4d0   :  { %299 = vrot.lane.b32.xlu0 %v2329_v52, %s2444_s1 }
 0x4d4   :  { %69 = vperm.xlu0 %2313, %v2510_v8  }
 0x4d8   :  { %2314 = vset.pattern.permute.xlu0 %v2448_v19 }
 0x542   :  { %v300_v54 = vpop.permute.xlu0 %299 }
 0x543   :  { %v302_v55 = vmul.f32 %v300_v54, %v285_v46 }
 0x545   :  { %304 = vrot.lane.b32.xlu1 %v302_v55, %s2445_s6 }
 0x553   :  { %v70_v57 = vpop.permute.xlu0 %69 }
 0x554   :  { %v72_v58 = vmul.f32 %v2530_v11, %v70_v57 }
 0x556   :  { %v73_v59 = vadd.f32 %v2538_v15, %v72_v58 }
 0x5b7   :  { %v305_v56 = vpop.permute.xlu1 %304 }
 0x5b8   :  { %307 = vst.msk [vmem:[#allocation2 + $0x8] sm:$0xff] %vm108_vm4, %v305_v56  ;;  %2019 = vmatmul.mubr.msk.f32.vlgmr.msra.gmra.mrb[2].mxu0 %vm108_vm4, %v305_v56 }
 0x5b9   :  { %2210 = vmatpush3.bf16.msra.mxu0 %v2508_v6  ;;  %2040 = vmatprep.mubr.msk.f32.mxu0 %vm2440_vm0, %v2441_v1 }
 0x5ba   :  { %2211 = vmatprep.subr.bf16.mxu0 %v2439_v0 }
 0x5bd   :  { %2213 = vmatpush3.bf16.msra.mxu0 %v2514_v9 }
 0x5be   :  { %2220 = vmatprep.subr.bf16.mxu0 %v2439_v0 }
 0x68b   :  { %v376_v60 = vpop.f32.mrb[2].mxu0 }
 0x68c   :  { %v380_v61 = vadd.f32 %v376_v60, %v73_v59  ;;  %v2020_v62 = vpop.f32.mrb[3].mxu0  ;;  %v2450_v60 = vmov 5  }
 0x68e   :  { %v381_v63 = vmul.f32 %v380_v61, %v2541_v18 }
 0x690   :  { %2330 = vtanh.f32 %v381_v63 }
 0x69a   :  { %v2331_v2 = vpop.eup %2330 }
 0x69b   :  { %v383_v3 = vmul.f32 %v2331_v2, %v2541_v18 }
 0x69d   :  { %v384_v4 = vadd.f32 %v383_v3, %v2544_v24 }
 0x69f   :  { %387 = vrot.lane.b32.xlu1 %v384_v4, %s2444_s1  ;;  %v385_v12 = vmul.f32 %v384_v4, %v296_v51 }
 0x711   :  { %v388_v5 = vpop.permute.xlu1 %387 }
 0x712   :  { %v390_v7 = vmul.f32 %v388_v5, %v384_v4 }
 0x714   :  { %392 = vrot.lane.b32.xlu1 %v390_v7, %s2445_s6 }
 0x786   :  { %v393_v14 = vpop.permute.xlu1 %392 }
 0x787   :  { %v395_v16 = vadd.f32 %v393_v14, %v385_v12 }
 0x789   :  { %2332 = vtanh.f32 %v395_v16 }
 0x793   :  { %v2333_v17 = vpop.eup %2332 }
 0x794   :  { %398 = vrot.lane.b32.xlu0 %v2333_v17, %s2444_s1 }
 0x798   :  { %75 = vperm.xlu0 %2314, %v2510_v8  }
 0x79c   :  { %2315 = vset.pattern.permute.xlu0 %v2449_v40 }
 0x806   :  { %v399_v20 = vpop.permute.xlu0 %398 }
 0x807   :  { %v401_v21 = vmul.f32 %v399_v20, %v384_v4 }
 0x809   :  { %403 = vrot.lane.b32.xlu1 %v401_v21, %s2445_s6 }
 0x817   :  { %v76_v23 = vpop.permute.xlu0 %75 }
 0x818   :  { %v78_v25 = vmul.f32 %v2530_v11, %v76_v23  ;;  %v902_v23 = vld [vmem:[#allocation5 + $0x48] sm:$0xff] }
 0x81a   :  { %v79_v26 = vadd.f32 %v2538_v15, %v78_v25  ;;  %v903_v25 = vld [vmem:[#allocation5 + $0x50] sm:$0xff] }
 0x87b   :  { %v404_v22 = vpop.permute.xlu1 %403 }
 0x87c   :  { %406 = vst.msk [vmem:[#allocation2 + $0x10] sm:$0xff] %vm108_vm4, %v404_v22  ;;  %2030 = vmatmul.mubr.msk.f32.vlgmr.msra.gmra.mrb[2].mxu1 %vm108_vm4, %v404_v22 }
 0x87d   :  { %2216 = vmatpush3.bf16.msra.mxu1 %v2508_v6  ;;  %2051 = vmatprep.mubr.msk.f32.mxu1 %vm2440_vm0, %v2441_v1 }
 0x87e   :  { %2217 = vmatprep.subr.bf16.mxu1 %v2439_v0 }
 0x881   :  { %2219 = vmatpush3.bf16.msra.mxu1 %v2514_v9 }
 0x882   :  { %2226 = vmatprep.subr.bf16.mxu1 %v2439_v0 }
 0x94f   :  { %v475_v27 = vpop.f32.mrb[2].mxu1 }
 0x950   :  { %v479_v28 = vadd.f32 %v475_v27, %v79_v26  ;;  %v2031_v29 = vpop.f32.mrb[3].mxu1  ;;  %v2232_v26 = vpack.c.bf16 %v903_v25, %v902_v23 }
 0x952   :  { %v480_v30 = vmul.f32 %v479_v28, %v2541_v18 }
 0x954   :  { %2334 = vtanh.f32 %v480_v30  ;;  %v2451_v30 = vmov 6  }
 0x95e   :  { %v2335_v31 = vpop.eup %2334 }
 0x95f   :  { %v482_v32 = vmul.f32 %v2335_v31, %v2541_v18  ;;  %v904_v31 = vld [vmem:[#allocation5 + $0x58] sm:$0xff] }
 0x961   :  { %v483_v33 = vadd.f32 %v482_v32, %v2544_v24  ;;  %v905_v32 = vld [vmem:[#allocation5 + $0x60] sm:$0xff] }
 0x963   :  { %486 = vrot.lane.b32.xlu1 %v483_v33, %s2444_s1  ;;  %v484_v36 = vmul.f32 %v483_v33, %v395_v16 }
 0x9d5   :  { %v487_v34 = vpop.permute.xlu1 %486 }
 0x9d6   :  { %v489_v35 = vmul.f32 %v487_v34, %v483_v33 }
 0x9d8   :  { %491 = vrot.lane.b32.xlu1 %v489_v35, %s2445_s6  ;;  %v907_v35 = vld [vmem:[#allocation2] sm:$0xff] }
 0xa4a   :  { %v492_v37 = vpop.permute.xlu1 %491 }
 0xa4b   :  { %v494_v38 = vadd.f32 %v492_v37, %v484_v36  ;;  %v908_v36 = vld [vmem:[#allocation2 + $0x8] sm:$0xff]  ;;  %v909_v37 = vld [vmem:[#allocation2 + $0x10] sm:$0xff] }
 0xa4d   :  { %2336 = vtanh.f32 %v494_v38 }
 0xa57   :  { %v2337_v39 = vpop.eup %2336 }
 0xa58   :  { %497 = vrot.lane.b32.xlu0 %v2337_v39, %s2444_s1 }
 0xa5c   :  { %81 = vperm.xlu0 %2315, %v2510_v8  }
 0xa60   :  { %2316 = vset.pattern.permute.xlu0 %v2450_v60 }
 0xaca   :  { %v498_v41 = vpop.permute.xlu0 %497 }
 0xacb   :  { %v500_v42 = vmul.f32 %v498_v41, %v483_v33  ;;  %v2236_v33 = vpack.c.bf16 %v905_v32, %v904_v31  ;;  %v2452_v31 = vmov 7  }
 0xacd   :  { %502 = vrot.lane.b32.xlu1 %v500_v42, %s2445_s6 }
 0xadb   :  { %v82_v44 = vpop.permute.xlu0 %81 }
 0xadc   :  { %v84_v45 = vmul.f32 %v2530_v11, %v82_v44 }
 0xade   :  { %v85_v46 = vadd.f32 %v2538_v15, %v84_v45 }
 0xb3f   :  { %v503_v43 = vpop.permute.xlu1 %502 }
 0xb40   :  { %505 = vst.msk [vmem:[#allocation2 + $0x18] sm:$0xff] %vm108_vm4, %v503_v43  ;;  %2041 = vmatmul.mubr.msk.f32.vlgmr.msra.gmra.mrb[4].mxu0 %vm108_vm4, %v503_v43 }
 0xb41   :  { %2222 = vmatpush3.bf16.msra.mxu0 %v2508_v6  ;;  %2062 = vmatprep.mubr.msk.f32.mxu0 %vm2440_vm0, %v2441_v1 }
 0xb42   :  { %2223 = vmatprep.subr.bf16.mxu0 %v2439_v0 }
 0xb45   :  { %2225 = vmatpush3.bf16.msra.mxu0 %v2514_v9 }
 0xb46   :  { %2233 = vmatprep.subr.bf16.mxu0 %v2232_v26 }
 0xc13   :  { %v574_v47 = vpop.f32.mrb[4].mxu0 }
 0xc14   :  { %v578_v48 = vadd.f32 %v574_v47, %v85_v46  ;;  %v2042_v49 = vpop.f32.mrb[5].mxu0 }
 0xc16   :  { %v579_v50 = vmul.f32 %v578_v48, %v2541_v18 }
 0xc18   :  { %2338 = vtanh.f32 %v579_v50 }
 0xc22   :  { %v2339_v51 = vpop.eup %2338 }
 0xc23   :  { %v581_v52 = vmul.f32 %v2339_v51, %v2541_v18 }
 0xc25   :  { %v582_v53 = vadd.f32 %v581_v52, %v2544_v24 }
 0xc27   :  { %585 = vrot.lane.b32.xlu1 %v582_v53, %s2444_s1  ;;  %v583_v56 = vmul.f32 %v582_v53, %v494_v38  ;;  %v910_v38 = vld [vmem:[#allocation2 + $0x18] sm:$0xff] }
 0xc99   :  { %v586_v54 = vpop.permute.xlu1 %585 }
 0xc9a   :  { %v588_v55 = vmul.f32 %v586_v54, %v582_v53 }
 0xc9c   :  { %590 = vrot.lane.b32.xlu1 %v588_v55, %s2445_s6 }
 0xd0e   :  { %v591_v57 = vpop.permute.xlu1 %590 }
 0xd0f   :  { %v593_v58 = vadd.f32 %v591_v57, %v583_v56 }
 0xd11   :  { %2340 = vtanh.f32 %v593_v58 }
 0xd1b   :  { %v2341_v59 = vpop.eup %2340 }
 0xd1c   :  { %596 = vrot.lane.b32.xlu0 %v2341_v59, %s2444_s1 }
 0xd20   :  { %87 = vperm.xlu0 %2316, %v2510_v8  }
 0xd24   :  { %2317 = vset.pattern.permute.xlu0 %v2451_v30 }
 0xd8e   :  { %v597_v61 = vpop.permute.xlu0 %596 }
 0xd8f   :  { %v599_v62 = vmul.f32 %v597_v61, %v582_v53 }
 0xd91   :  { %601 = vrot.lane.b32.xlu1 %v599_v62, %s2445_s6 }
 0xd9f   :  { %v88_v2 = vpop.permute.xlu0 %87 }
 0xda0   :  { %v90_v3 = vmul.f32 %v2530_v11, %v88_v2  ;;  %v1049_v2 = vld [vmem:[#allocation5 + $0x30] sm:$0xff] }
 0xda2   :  { %v91_v4 = vadd.f32 %v2538_v15, %v90_v3 }
 0xe03   :  { %v602_v63 = vpop.permute.xlu1 %601 }
 0xe04   :  { %604 = vst.msk [vmem:[#allocation2 + $0x20] sm:$0xff] %vm108_vm4, %v602_v63  ;;  %2052 = vmatmul.mubr.msk.f32.vlgmr.msra.gmra.mrb[4].mxu1 %vm108_vm4, %v602_v63  ;;  %v1048_v63 = vld [vmem:[#allocation5 + $0x28] sm:$0xff] }
 0xe05   :  { %2228 = vmatpush3.bf16.msra.mxu1 %v2508_v6  ;;  %2073 = vmatprep.mubr.msk.f32.mxu1 %vm2440_vm0, %v2441_v1  ;;  %v2672_v3 = vpack.c.bf16 %v1049_v2, %v1048_v63 }
 0xe06   :  { %2229 = vmatprep.subr.bf16.mxu1 %v2439_v0 }
 0xe09   :  { %2231 = vmatpush3.bf16.msra.mxu1 %v2514_v9 }
 0xe0a   :  { %2240 = vmatprep.subr.bf16.mxu1 %v2439_v0 }
 0xe0b   :  { %v911_v39 = vld [vmem:[#allocation2 + $0x20] sm:$0xff] }
 0xed7   :  { %v673_v5 = vpop.f32.mrb[4].mxu1 }
 0xed8   :  { %v677_v7 = vadd.f32 %v673_v5, %v91_v4  ;;  %v2053_v12 = vpop.f32.mrb[5].mxu1  ;;  %v1050_v4 = vld [vmem:[#allocation5 + $0x38] sm:$0xff]  ;;  %v1051_v5 = vld [vmem:[#allocation5 + $0x40] sm:$0xff] }
 0xeda   :  { %v678_v14 = vmul.f32 %v677_v7, %v2541_v18  ;;  %v2676_v7 = vpack.c.bf16 %v1051_v5, %v1050_v4 }
 0xedc   :  { %2342 = vtanh.f32 %v678_v14 }
 0xee6   :  { %v2343_v6 = vpop.eup %2342 }
 0xee7   :  { %v680_v16 = vmul.f32 %v2343_v6, %v2541_v18 }
 0xee9   :  { %v681_v17 = vadd.f32 %v680_v16, %v2544_v24 }
 0xeeb   :  { %684 = vrot.lane.b32.xlu1 %v681_v17, %s2444_s1  ;;  %v682_v20 = vmul.f32 %v681_v17, %v593_v58 }
 0xf5d   :  { %v685_v9 = vpop.permute.xlu1 %684 }
 0xf5e   :  { %v687_v19 = vmul.f32 %v685_v9, %v681_v17 }
 0xf60   :  { %689 = vrot.lane.b32.xlu1 %v687_v19, %s2445_s6  ;;  %v2697_v19 = vld [vmem:[#allocation5 + $0x2] ss:$0 sm:$0xff] }
 0xfd2   :  { %v690_v21 = vpop.permute.xlu1 %689 }
 0xfd3   :  { %v692_v22 = vadd.f32 %v690_v21, %v682_v20 }
 0xfd5   :  { %2344 = vtanh.f32 %v692_v22 }
 0xfdf   :  { %v2345_v27 = vpop.eup %2344 }
 0xfe0   :  { %695 = vrot.lane.b32.xlu0 %v2345_v27, %s2444_s1 }
 0xfe4   :  { %93 = vperm.xlu0 %2317, %v2510_v8  }
 0xfe8   :  { %2318 = vset.pattern.permute.xlu0 %v2452_v31 }
0x1052   :  { %v696_v28 = vpop.permute.xlu0 %695 }
0x1053   :  { %v698_v29 = vmul.f32 %v696_v28, %v681_v17 }
0x1055   :  { %700 = vrot.lane.b32.xlu1 %v698_v29, %s2445_s6 }
0x1063   :  { %v94_v41 = vpop.permute.xlu0 %93 }
0x1064   :  { %v96_v42 = vmul.f32 %v2530_v11, %v94_v41 }
0x1066   :  { %v97_v43 = vadd.f32 %v2538_v15, %v96_v42 }
0x10c7   :  { %v701_v34 = vpop.permute.xlu1 %700 }
0x10c8   :  { %703 = vst.msk [vmem:[#allocation2 + $0x28] sm:$0xff] %vm108_vm4, %v701_v34  ;;  %2063 = vmatmul.mubr.msk.f32.vlgmr.msra.gmra.mrb[6].mxu0 %vm108_vm4, %v701_v34 }
0x10c9   :  { %2235 = vmatpush3.bf16.msra.mxu0 %v2232_v26  ;;  %2084 = vmatprep.mubr.msk.f32.mxu0 %vm108_vm4, %v907_v35 }
0x10ca   :  { %2237 = vmatprep.subr.bf16.mxu0 %v2236_v33 }
0x10cd   :  { %2239 = vmatpush3.bf16.msra.mxu0 %v2236_v33 }
0x10ce   :  { %2252 = vmatprep.subr.bf16.mxu0 %v2439_v0 }
0x10cf   :  { %v912_v40 = vld [vmem:[#allocation2 + $0x28] sm:$0xff] }
0x10d0   :  { %2085 = vmatmul.mubr.msk.f32.vlgmr.msra.gmra.mrb[8].mxu0 %vm108_vm4, %v908_v36 }
0x10d1   :  { %2087 = vmatprep.mubr.msk.f32.mxu0 %vm108_vm4, %v909_v37  ;;  %2254 = vmatpush3.bf16.msra.mxu0 %v2672_v3 }
0x10d2   :  { %2255 = vmatprep.subr.bf16.mxu0 %v2439_v0 }
0x10d4   :  { %2088 = vmatmul.mubr.msk.f32.gmra.mrb[10].mxu0 %vm108_vm4, %v910_v38 }
0x10d5   :  { %2090 = vmatprep.mubr.msk.f32.mxu0 %vm108_vm4, %v911_v39  ;;  %2257 = vmatpush3.bf16.msra.mxu0 %v2676_v7 }
0x10d6   :  { %2264 = vmatprep.subr.bf16.mxu0 %v2439_v0 }
0x10d8   :  { %2091 = vmatmul.mubr.msk.f32.gmra.mrb[12].mxu0 %vm108_vm4, %v912_v40 }
0x119b   :  { %v772_v44 = vpop.f32.mrb[6].mxu0 }
0x119c   :  { %v776_v45 = vadd.f32 %v772_v44, %v97_v43  ;;  %v2064_v46 = vpop.f32.mrb[7].mxu0 }
0x119e   :  { %v777_v47 = vmul.f32 %v776_v45, %v2541_v18 }
0x11a0   :  { %2346 = vtanh.f32 %v777_v47 }
0x11a3   :  { %v2654_v48 = vpop.f32.mrb[8].mxu0 }
0x11a4   :  { %v1009_v49 = vpop.f32.mrb[9].mxu0 }
0x11a5   :  { %v1010_v20 = vadd.f32 %v2697_v19, %v1009_v49 }
0x11a7   :  { %v2656_v50 = vpop.f32.mrb[10].mxu0 }
0x11a8   :  { %v2658_v51 = vpop.f32.mrb[11].mxu0 }
0x11aa   :  { %v2347_v52 = vpop.eup %2346 }
0x11ab   :  { %v2660_v53 = vpop.f32.mrb[12].mxu0  ;;  %v779_v54 = vmul.f32 %v2347_v52, %v2541_v18 }
0x11ac   :  { %v2663_v55 = vpop.f32.mrb[13].mxu0 }
0x11ad   :  { %v780_v56 = vadd.f32 %v779_v54, %v2544_v24  ;;  %v1015_v54 = vadd.f32 %v2654_v48, %v2697_v19 }
0x11af   :  { %783 = vrot.lane.b32.xlu1 %v780_v56, %s2444_s1  ;;  %v781_v59 = vmul.f32 %v780_v56, %v692_v22 }
0x1221   :  { %v784_v57 = vpop.permute.xlu1 %783 }
0x1222   :  { %v786_v58 = vmul.f32 %v784_v57, %v780_v56 }
0x1224   :  { %788 = vrot.lane.b32.xlu1 %v786_v58, %s2445_s6 }
0x1296   :  { %v789_v60 = vpop.permute.xlu1 %788 }
0x1297   :  { %v2668_v61 = vadd.f32 %v789_v60, %v781_v59 }
0x1299   :  { %2348 = vtanh.f32 %v2668_v61 }
0x12a3   :  { %v2349_v62 = vpop.eup %2348 }
0x12a4   :  { %794 = vrot.lane.b32.xlu0 %v2349_v62, %s2444_s1 }
0x1316   :  { %v795_v12 = vpop.permute.xlu0 %794 }
0x1317   :  { %v797_v14 = vmul.f32 %v795_v12, %v780_v56 }
0x1319   :  { %799 = vrot.lane.b32.xlu1 %v797_v14, %s2445_s6 }
0x138b   :  { %v800_v6 = vpop.permute.xlu1 %799 }
0x138c   :  { %802 = vst.msk [vmem:[#allocation2 + $0x30] sm:$0xff] %vm108_vm4, %v800_v6  ;;  %2074 = vmatmul.mubr.msk.f32.vlgmr.msra.gmra.mrb[6].mxu1 %vm108_vm4, %v800_v6 }
0x138d   :  { %2242 = vmatpush3.bf16.msra.mxu1 %v2672_v3  ;;  %2104 = vmatprep.mubr.msk.f32.mxu1 %vm2440_vm0, %v2441_v1 }
0x138e   :  { %2243 = vmatprep.subr.bf16.mxu1 %v2439_v0 }
0x1391   :  { %2245 = vmatpush3.bf16.msra.mxu1 %v2676_v7 }
0x1392   :  { %2246 = vmatprep.subr.bf16.mxu1 %v2439_v0 }
0x1393   :  { %v913_v16 = vld [vmem:[#allocation2 + $0x30] sm:$0xff] }
0x1394   :  { %2105 = vmatmul.mubr.f32.vlgmr.msra.gmra.mrb[8].mxu1 %v2441_v1  ;;  %2093 = vmatprep.mubr.msk.f32.mxu0 %vm108_vm4, %v913_v16 }
0x1395   :  { %2248 = vmatpush3.bf16.msra.mxu1 %v2672_v3  ;;  %2115 = vmatprep.mubr.msk.f32.mxu1 %vm2440_vm0, %v2441_v1 }
0x1396   :  { %2249 = vmatprep.subr.bf16.mxu1 %v2439_v0 }
0x1399   :  { %2251 = vmatpush3.bf16.msra.mxu1 %v2676_v7 }
0x139a   :  { %2258 = vmatprep.subr.bf16.mxu1 %v2439_v0 }
0x145f   :  { %v871_v17 = vpop.f32.mrb[6].mxu1 }
0x1460   :  { %v2075_v9 = vpop.f32.mrb[7].mxu1 }
0x1467   :  { %v1118_v21 = vpop.f32.mrb[8].mxu1 }
0x1468   :  { %v1122_v22 = vadd.f32 %v1118_v21, %v1010_v20  ;;  %v2106_v23 = vpop.f32.mrb[9].mxu1 }
0x146a   :  { %v1123_v25 = vmul.f32 %v1122_v22, %v2541_v18 }
0x146c   :  { %2350 = vtanh.f32 %v1123_v25  ;;  %v1020_v25 = vadd.f32 %v2697_v19, %v2658_v51 }
0x1476   :  { %v2351_v26 = vpop.eup %2350 }
0x1477   :  { %v1125_v27 = vmul.f32 %v2351_v26, %v2541_v18 }
0x1479   :  { %v1126_v28 = vadd.f32 %v1125_v27, %v2544_v24 }
0x147b   :  { %1129 = vrot.lane.b32.xlu0 %v1126_v28, %s2444_s1  ;;  %v1127_v32 = vmul.f32 0.0, %v1126_v28 }
0x14ed   :  { %v1130_v29 = vpop.permute.xlu0 %1129 }
0x14ee   :  { %v1132_v30 = vmul.f32 %v1130_v29, %v1126_v28 }
0x14f0   :  { %1134 = vrot.lane.b32.xlu1 %v1132_v30, %s2445_s6 }
0x1562   :  { %v1135_v33 = vpop.permute.xlu1 %1134 }
0x1563   :  { %v1137_v34 = vadd.f32 %v1135_v33, %v1127_v32 }
0x1565   :  { %2352 = vtanh.f32 %v1137_v34 }
0x156f   :  { %v2353_v35 = vpop.eup %2352 }
0x1570   :  { %1140 = vrot.lane.b32.xlu0 %v2353_v35, %s2444_s1 }
0x1574   :  { %99 = vperm.xlu0 %2318, %v2510_v8  }
0x15e2   :  { %v1141_v36 = vpop.permute.xlu0 %1140 }
0x15e3   :  { %v1143_v37 = vmul.f32 %v1141_v36, %v1126_v28 }
0x15e5   :  { %1145 = vrot.lane.b32.xlu1 %v1143_v37, %s2445_s6 }
0x15f3   :  { %v100_v38 = vpop.permute.xlu0 %99 }
0x15f4   :  { %v102_v39 = vmul.f32 %v2530_v11, %v100_v38 }
0x15f6   :  { %v103_v40 = vadd.f32 %v2538_v15, %v102_v39 }
0x15f8   :  { %v875_v41 = vadd.f32 %v871_v17, %v103_v40 }
0x15fa   :  { %v876_v42 = vmul.f32 %v875_v41, %v2541_v18  ;;  %v1025_v41 = vadd.f32 %v2656_v50, %v2697_v19 }
0x15fc   :  { %2354 = vtanh.f32 %v876_v42 }
0x1606   :  { %v2355_v43 = vpop.eup %2354 }
0x1607   :  { %v878_v44 = vmul.f32 %v2355_v43, %v2541_v18 }
0x1609   :  { %v879_v45 = vadd.f32 %v878_v44, %v2544_v24 }
0x160b   :  { %882 = vrot.lane.b32.xlu1 %v879_v45, %s2444_s1  ;;  %v880_v46 = vmul.f32 %v879_v45, %v2668_v61 }
0x1657   :  { %v1146_v8 = vpop.permute.xlu1 %1145 }
0x1658   :  { %2116 = vmatmul.mubr.msk.f32.vlgmr.msra.gmra.mrb[10].mxu1 %vm108_vm4, %v1146_v8 }
0x1659   :  { %2260 = vmatpush3.bf16.msra.mxu1 %v2672_v3  ;;  %2137 = vmatprep.mubr.msk.f32.mxu1 %vm2440_vm0, %v2441_v1 }
0x165a   :  { %2261 = vmatprep.subr.bf16.mxu1 %v2439_v0 }
0x165d   :  { %2263 = vmatpush3.bf16.msra.mxu1 %v2676_v7 }
0x165e   :  { %2270 = vmatprep.subr.bf16.mxu1 %v2439_v0 }
0x167d   :  { %v883_v11 = vpop.permute.xlu1 %882 }
0x167e   :  { %v885_v15 = vmul.f32 %v883_v11, %v879_v45 }
0x1680   :  { %887 = vrot.lane.b32.xlu0 %v885_v15, %s2445_s6 }
0x16f2   :  { %v888_v47 = vpop.permute.xlu0 %887 }
0x16f3   :  { %v890_v49 = vadd.f32 %v888_v47, %v880_v46 }
0x16f5   :  { %2356 = vtanh.f32 %v890_v49 }
0x16ff   :  { %v2357_v52 = vpop.eup %2356 }
0x1700   :  { %893 = vrot.lane.b32.xlu0 %v2357_v52, %s2444_s1 }
0x172b   :  { %v1215_v56 = vpop.f32.mrb[10].mxu1 }
0x172c   :  { %v1219_v57 = vadd.f32 %v1215_v56, %v1015_v54  ;;  %v2117_v58 = vpop.f32.mrb[11].mxu1 }
0x172e   :  { %v1220_v59 = vmul.f32 %v1219_v57, %v2541_v18 }
0x1730   :  { %2358 = vtanh.f32 %v1220_v59  ;;  %v1030_v59 = vadd.f32 %v2697_v19, %v2663_v55 }
0x173a   :  { %v2359_v60 = vpop.eup %2358 }
0x173b   :  { %v1222_v62 = vmul.f32 %v2359_v60, %v2541_v18 }
0x173d   :  { %v1223_v61 = vadd.f32 %v1222_v62, %v2544_v24 }
0x173f   :  { %1226 = vrot.lane.b32.xlu1 %v1223_v61, %s2444_s1  ;;  %v1224_v14 = vmul.f32 %v1223_v61, %v1137_v34 }
0x1772   :  { %v894_v63 = vpop.permute.xlu0 %893 }
0x1773   :  { %v896_v2 = vmul.f32 %v894_v63, %v879_v45 }
0x1775   :  { %898 = vrot.lane.b32.xlu0 %v896_v2, %s2445_s6 }
0x17b1   :  { %v1227_v4 = vpop.permute.xlu1 %1226 }
0x17b2   :  { %v1229_v5 = vmul.f32 %v1227_v4, %v1223_v61 }
0x17b4   :  { %1231 = vrot.lane.b32.xlu1 %v1229_v5, %s2445_s6 }
0x17e7   :  { %v899_v48 = vpop.permute.xlu0 %898 }
0x17e8   :  { %901 = vst.msk [vmem:[#allocation2 + $0x38] sm:$0xff] %vm108_vm4, %v899_v48 }
0x17ef   :  { %v914_v12 = vld [vmem:[#allocation2 + $0x38] sm:$0xff] }
0x17f0   :  { %2094 = vmatmul.mubr.msk.f32.gmra.mrb[14].mxu0 %vm108_vm4, %v914_v12 }
0x17f1   :  { %2126 = vmatprep.mubr.msk.f32.mxu0 %vm2440_vm0, %v2441_v1 }
0x1826   :  { %v1232_v6 = vpop.permute.xlu1 %1231 }
0x1827   :  { %v1234_v16 = vadd.f32 %v1232_v6, %v1224_v14 }
0x1829   :  { %2360 = vtanh.f32 %v1234_v16 }
0x1833   :  { %v2361_v17 = vpop.eup %2360 }
0x1834   :  { %1237 = vrot.lane.b32.xlu1 %v2361_v17, %s2444_s1 }
0x18a6   :  { %v1238_v9 = vpop.permute.xlu1 %1237 }
0x18a7   :  { %v1240_v20 = vmul.f32 %v1238_v9, %v1223_v61 }
0x18a9   :  { %1242 = vrot.lane.b32.xlu1 %v1240_v20, %s2445_s6 }
0x18c3   :  { %v2738_v21 = vpop.f32.mrb[14].mxu0 }
0x18c4   :  { %v2740_v22 = vpop.f32.mrb[15].mxu0 }
0x191b   :  { %v1243_v23 = vpop.permute.xlu1 %1242 }
0x191c   :  { %2127 = vmatmul.mubr.msk.f32.vlgmr.msra.gmra.mrb[16].mxu0 %vm108_vm4, %v1243_v23  ;;  %v1035_v23 = vadd.f32 %v2660_v53, %v2697_v19 }
0x191d   :  { %2266 = vmatpush3.bf16.msra.mxu0 %v2672_v3  ;;  %2148 = vmatprep.mubr.msk.f32.mxu0 %vm2440_vm0, %v2441_v1 }
0x191e   :  { %2267 = vmatprep.subr.bf16.mxu0 %v2439_v0 }
0x1921   :  { %2269 = vmatpush3.bf16.msra.mxu0 %v2676_v7 }
0x1922   :  { %2276 = vmatprep.subr.bf16.mxu0 %v2439_v0 }
0x19ef   :  { %v1312_v26 = vpop.f32.mrb[16].mxu0 }
0x19f0   :  { %v1316_v27 = vadd.f32 %v1312_v26, %v1020_v25  ;;  %v2128_v28 = vpop.f32.mrb[17].mxu0 }
0x19f2   :  { %v1317_v29 = vmul.f32 %v1316_v27, %v2541_v18 }
0x19f4   :  { %2362 = vtanh.f32 %v1317_v29 }
0x19fe   :  { %v2363_v30 = vpop.eup %2362 }
0x19ff   :  { %v1319_v31 = vmul.f32 %v2363_v30, %v2541_v18 }
0x1a01   :  { %v1320_v32 = vadd.f32 %v1319_v31, %v2544_v24 }
0x1a03   :  { %1323 = vrot.lane.b32.xlu0 %v1320_v32, %s2444_s1  ;;  %v1321_v35 = vmul.f32 %v1320_v32, %v1234_v16 }
0x1a75   :  { %v1324_v33 = vpop.permute.xlu0 %1323 }
0x1a76   :  { %v1326_v34 = vmul.f32 %v1324_v33, %v1320_v32 }
0x1a78   :  { %1328 = vrot.lane.b32.xlu1 %v1326_v34, %s2445_s6 }
0x1aea   :  { %v1329_v36 = vpop.permute.xlu1 %1328 }
0x1aeb   :  { %v1331_v51 = vadd.f32 %v1329_v36, %v1321_v35 }
0x1aed   :  { %2364 = vtanh.f32 %v1331_v51 }
0x1af7   :  { %v2365_v37 = vpop.eup %2364 }
0x1af8   :  { %1334 = vrot.lane.b32.xlu0 %v2365_v37, %s2444_s1 }
0x1b6a   :  { %v1335_v38 = vpop.permute.xlu0 %1334 }
0x1b6b   :  { %v1337_v39 = vmul.f32 %v1335_v38, %v1320_v32 }
0x1b6d   :  { %1339 = vrot.lane.b32.xlu1 %v1337_v39, %s2445_s6 }
0x1bdf   :  { %v1340_v40 = vpop.permute.xlu1 %1339 }
0x1be0   :  { %2138 = vmatmul.mubr.msk.f32.vlgmr.msra.gmra.mrb[12].mxu1 %vm108_vm4, %v1340_v40 }
0x1be1   :  { %2272 = vmatpush3.bf16.msra.mxu1 %v2672_v3  ;;  %2159 = vmatprep.mubr.msk.f32.mxu1 %vm2440_vm0, %v2441_v1 }
0x1be2   :  { %2273 = vmatprep.subr.bf16.mxu1 %v2439_v0 }
0x1be5   :  { %2275 = vmatpush3.bf16.msra.mxu1 %v2676_v7 }
0x1be6   :  { %2282 = vmatprep.subr.bf16.mxu1 %v2439_v0 }
0x1cb3   :  { %v1409_v42 = vpop.f32.mrb[12].mxu1 }
0x1cb4   :  { %v1413_v43 = vadd.f32 %v1409_v42, %v1025_v41  ;;  %v2139_v44 = vpop.f32.mrb[13].mxu1 }
0x1cb6   :  { %v1414_v45 = vmul.f32 %v1413_v43, %v2541_v18 }
0x1cb8   :  { %2366 = vtanh.f32 %v1414_v45 }
0x1cc2   :  { %v2367_v8 = vpop.eup %2366 }
0x1cc3   :  { %v1416_v11 = vmul.f32 %v2367_v8, %v2541_v18 }
0x1cc5   :  { %v1417_v15 = vadd.f32 %v1416_v11, %v2544_v24 }
0x1cc7   :  { %1420 = vrot.lane.b32.xlu0 %v1417_v15, %s2444_s1  ;;  %v1418_v49 = vmul.f32 %v1417_v15, %v1331_v51  ;;  %v1040_v51 = vadd.f32 %v2697_v19, %v2740_v22 }
0x1d39   :  { %v1421_v46 = vpop.permute.xlu0 %1420 }
0x1d3a   :  { %v1423_v47 = vmul.f32 %v1421_v46, %v1417_v15 }
0x1d3c   :  { %1425 = vrot.lane.b32.xlu1 %v1423_v47, %s2445_s6 }
0x1dae   :  { %v1426_v52 = vpop.permute.xlu1 %1425 }
0x1daf   :  { %v1428_v50 = vadd.f32 %v1426_v52, %v1418_v49  ;;  %v1045_v52 = vadd.f32 %v2738_v21, %v2697_v19  ;;  %v2386_v21 = vld [vmem:[#allocation3] sm:$0xff] }
0x1db1   :  { %2368 = vtanh.f32 %v1428_v50 }
0x1dbb   :  { %v2369_v54 = vpop.eup %2368 }
0x1dbc   :  { %1431 = vrot.lane.b32.xlu0 %v2369_v54, %s2444_s1 }
0x1e2e   :  { %v1432_v56 = vpop.permute.xlu0 %1431 }
0x1e2f   :  { %v1434_v57 = vmul.f32 %v1432_v56, %v1417_v15 }
0x1e31   :  { %1436 = vrot.lane.b32.xlu1 %v1434_v57, %s2445_s6 }
0x1ea3   :  { %v1437_v58 = vpop.permute.xlu1 %1436 }
0x1ea4   :  { %2149 = vmatmul.mubr.msk.f32.vlgmr.msra.gmra.mrb[18].mxu0 %vm108_vm4, %v1437_v58 }
0x1ea5   :  { %2278 = vmatpush3.bf16.msra.mxu0 %v2672_v3  ;;  %2170 = vmatprep.mubr.msk.f32.mxu0 %vm2440_vm0, %v2441_v1 }
0x1ea6   :  { %2279 = vmatprep.subr.bf16.mxu0 %v2439_v0 }
0x1ea9   :  { %2281 = vmatpush3.bf16.msra.mxu0 %v2676_v7 }
0x1f77   :  { %v1506_v60 = vpop.f32.mrb[18].mxu0 }
0x1f78   :  { %v1510_v62 = vadd.f32 %v1506_v60, %v1030_v59  ;;  %v2150_v61 = vpop.f32.mrb[19].mxu0 }
0x1f7a   :  { %v1511_v63 = vmul.f32 %v1510_v62, %v2541_v18  ;;  %v1838_v62 = vshrl.u32 %v38_v10, 7 }
0x1f7c   :  { %2370 = vtanh.f32 %v1511_v63 }
0x1f86   :  { %v2371_v2 = vpop.eup %2370 }
0x1f87   :  { %v1513_v4 = vmul.f32 %v2371_v2, %v2541_v18  ;;  %v1839_v2 = vsub.s32 0, %v1838_v62 }
0x1f89   :  { %v1514_v5 = vadd.f32 %v1513_v4, %v2544_v24  ;;  %v1823_v4 = vld [vmem:[#allocation5 + $0x68] sm:$0x3] }
0x1f8a   :  { %v1840_v19 = vrot.slane %v1823_v4, %v1839_v2 }
0x1f8b   :  { %1517 = vrot.lane.b32.xlu0 %v1514_v5, %s2444_s1  ;;  %v1515_v14 = vmul.f32 %v1514_v5, %v1428_v50 }
0x1ffd   :  { %v1518_v48 = vpop.permute.xlu0 %1517 }
0x1ffe   :  { %v1520_v12 = vmul.f32 %v1518_v48, %v1514_v5  ;;  %v2453_v48 = vmov 9  }
0x1fff   :  { %2320 = vset.pattern.permute.xlu1 %v2453_v48 }
0x2000   :  { %1522 = vrot.lane.b32.xlu1 %v1520_v12, %s2445_s6  ;;  %v2454_v12 = vmov 8  }
0x2001   :  { %2319 = vset.pattern.permute.xlu0 %v2454_v12 }
0x2072   :  { %v1523_v6 = vpop.permute.xlu1 %1522 }
0x2073   :  { %v1525_v55 = vadd.f32 %v1523_v6, %v1515_v14 }
0x2075   :  { %2372 = vtanh.f32 %v1525_v55 }
0x207f   :  { %v2373_v16 = vpop.eup %2372 }
0x2080   :  { %1528 = vrot.lane.b32.xlu0 %v2373_v16, %s2444_s1 }
0x20f2   :  { %v1529_v17 = vpop.permute.xlu0 %1528 }
0x20f3   :  { %v1531_v9 = vmul.f32 %v1529_v17, %v1514_v5  ;;  %v2288_v5 = vtrunc.f32 %v2386_v21 }
0x20f5   :  { %1533 = vrot.lane.b32.xlu1 %v1531_v9, %s2445_s6 }
0x2167   :  { %v1534_v20 = vpop.permute.xlu1 %1533 }
0x2168   :  { %2160 = vmatmul.mubr.msk.f32.vlgmr.msra.gmra.mrb[14].mxu1 %vm108_vm4, %v1534_v20 }
0x2169   :  { %2284 = vmatpush3.bf16.msra.mxu1 %v2672_v3  ;;  %2181 = vmatprep.mubr.msk.f32.mxu1 %vm2440_vm0, %v2441_v1 }
0x216a   :  { %2285 = vmatprep.subr.bf16.mxu1 %v2439_v0 }
0x216d   :  { %2287 = vmatpush3.bf16.msra.mxu1 %v2676_v7 }
0x223b   :  { %v1603_v25 = vpop.f32.mrb[14].mxu1 }
0x223c   :  { %v1607_v26 = vadd.f32 %v1603_v25, %v1035_v23  ;;  %v2161_v27 = vpop.f32.mrb[15].mxu1 }
0x223e   :  { %v1608_v28 = vmul.f32 %v1607_v26, %v2541_v18  ;;  %v1855_v26 = vsub.s32 1, %v1838_v62 }
0x2240   :  { %2374 = vtanh.f32 %v1608_v28  ;;  %v1856_v27 = vrot.slane %v1823_v4, %v1855_v26 }
0x224a   :  { %v2375_v29 = vpop.eup %2374 }
0x224b   :  { %v1610_v30 = vmul.f32 %v2375_v29, %v2541_v18 }
0x224d   :  { %v1611_v3 = vadd.f32 %v1610_v30, %v2544_v24 }
0x224f   :  { %1614 = vrot.lane.b32.xlu0 %v1611_v3, %s2444_s1  ;;  %v1612_v7 = vmul.f32 %v1611_v3, %v1525_v55 }
0x22c1   :  { %v1615_v31 = vpop.permute.xlu0 %1614 }
0x22c2   :  { %v1617_v0 = vmul.f32 %v1615_v31, %v1611_v3 }
0x22c4   :  { %1619 = vrot.lane.b32.xlu1 %v1617_v0, %s2445_s6 }
0x2336   :  { %v1620_v32 = vpop.permute.xlu1 %1619 }
0x2337   :  { %v1622_v53 = vadd.f32 %v1620_v32, %v1612_v7 }
0x2339   :  { %2376 = vtanh.f32 %v1622_v53 }
0x2343   :  { %v2377_v33 = vpop.eup %2376 }
0x2344   :  { %1625 = vrot.lane.b32.xlu0 %v2377_v33, %s2444_s1 }
0x23b6   :  { %v1626_v34 = vpop.permute.xlu0 %1625 }
0x23b7   :  { %v1628_v35 = vmul.f32 %v1626_v34, %v1611_v3 }
0x23b9   :  { %1630 = vrot.lane.b32.xlu1 %v1628_v35, %s2445_s6 }
0x242b   :  { %v1631_v36 = vpop.permute.xlu1 %1630 }
0x242c   :  { %2171 = vmatmul.mubr.msk.f32.vlgmr.msra.gmra.mrb[20].mxu0 %vm108_vm4, %v1631_v36 }
0x24ff   :  { %v1700_v37 = vpop.f32.mrb[20].mxu0 }
0x2500   :  { %v1704_v38 = vadd.f32 %v1700_v37, %v1040_v51  ;;  %v2172_v39 = vpop.f32.mrb[21].mxu0 }
0x2502   :  { %v1705_v40 = vmul.f32 %v1704_v38, %v2541_v18 }
0x2504   :  { %2378 = vtanh.f32 %v1705_v40 }
0x250e   :  { %v2379_v41 = vpop.eup %2378 }
0x250f   :  { %v1707_v42 = vmul.f32 %v2379_v41, %v2541_v18 }
0x2511   :  { %v1708_v43 = vadd.f32 %v1707_v42, %v2544_v24 }
0x2513   :  { %1711 = vrot.lane.b32.xlu0 %v1708_v43, %s2444_s1  ;;  %v1709_v8 = vmul.f32 %v1708_v43, %v1622_v53 }
0x2585   :  { %v1712_v44 = vpop.permute.xlu0 %1711 }
0x2586   :  { %v1714_v45 = vmul.f32 %v1712_v44, %v1708_v43 }
0x2588   :  { %1716 = vrot.lane.b32.xlu1 %v1714_v45, %s2445_s6 }
0x25fa   :  { %v1717_v11 = vpop.permute.xlu1 %1716 }
0x25fb   :  { %v1719_v22 = vadd.f32 %v1717_v11, %v1709_v8 }
0x25fd   :  { %2380 = vtanh.f32 %v1719_v22 }
0x2607   :  { %v2381_v15 = vpop.eup %2380 }
0x2608   :  { %1722 = vrot.lane.b32.xlu0 %v2381_v15, %s2444_s1 }
0x267a   :  { %v1723_v46 = vpop.permute.xlu0 %1722 }
0x267b   :  { %v1725_v47 = vmul.f32 %v1723_v46, %v1708_v43 }
0x267d   :  { %1727 = vrot.lane.b32.xlu1 %v1725_v47, %s2445_s6 }
0x26ef   :  { %v1728_v49 = vpop.permute.xlu1 %1727 }
0x26f0   :  { %2182 = vmatmul.mubr.msk.f32.vlgmr.msra.gmra.mrb[16].mxu1 %vm108_vm4, %v1728_v49 }
0x27c3   :  { %v1797_v50 = vpop.f32.mrb[16].mxu1 }
0x27c4   :  { %v1801_v54 = vadd.f32 %v1797_v50, %v1045_v52  ;;  %v2183_v56 = vpop.f32.mrb[17].mxu1 }
0x27c6   :  { %v1802_v57 = vmul.f32 %v1801_v54, %v2541_v18 }
0x27c8   :  { %2382 = vtanh.f32 %v1802_v57 }
0x27d2   :  { %v2383_v58 = vpop.eup %2382 }
0x27d3   :  { %v1804_v59 = vmul.f32 %v2383_v58, %v2541_v18  ;;  %v2289_v18 = vcvt.f32.s32 %v2288_v5 }
0x27d5   :  { %v1805_v60 = vadd.f32 %v1804_v59, %v2544_v24  ;;  %v1829_v24 = vadd.s32 8, %v2289_v18 }
0x27d7   :  { %1808 = vrot.lane.b32.xlu0 %v1805_v60, %s2444_s1  ;;  %v1806_v14 = vmul.f32 %v1805_v60, %v1719_v22 }
0x2849   :  { %v1809_v61 = vpop.permute.xlu0 %1808 }
0x284a   :  { %v1811_v63 = vmul.f32 %v1809_v61, %v1805_v60 }
0x284c   :  { %1813 = vrot.lane.b32.xlu1 %v1811_v63, %s2445_s6 }
0x2850   :  { %1842 = vrot.lane.b32.xlu1 %v1840_v19, %s2455_s7 }
0x2854   :  { %1831 = vperm.xlu1 %2320, %v1829_v24  }
0x28be   :  { %v1814_v10 = vpop.permute.xlu1 %1813 }
0x28bf   :  { %v1816_v6 = vadd.f32 %v1814_v10, %v1806_v14 }
0x28c1   :  { %2384 = vtanh.f32 %v1816_v6 }
0x28c2   :  { %v1843_v17 = vpop.permute.xlu1 %1842 }
0x28cb   :  { %v2385_v55 = vpop.eup %2384 }
0x28cc   :  { %1819 = vrot.lane.b32.xlu0 %v2385_v55, %s2444_s1 }
0x28d0   :  { %1826 = vperm.xlu0 %2319, %v2289_v18  }
0x28d3   :  { %v1832_v25 = vpop.permute.xlu1 %1831 }
0x28d4   :  { %2321 = vset.pattern.permute.xlu0 %v2453_v48  ;;  %vm1833_vm6 = vcmp.eq.s32.totalorder %v2533_v13, %v1832_v25 }
0x293e   :  { %v1820_v16 = vpop.permute.xlu0 %1819 }
0x293f   :  { %v1822_v9 = vmul.f32 %v1820_v16, %v1805_v60 }
0x2941   :  { %v1845_v20 = vmul.f32 %v1843_v17, %v1822_v9 }
0x2943   :  { %1847 = vrot.lane.b32.xlu1 %v1845_v20, %s2445_s6 }
0x294f   :  { %v1827_v23 = vpop.permute.xlu0 %1826 }
0x2950   :  { %vm1828_vm5 = vcmp.eq.s32.totalorder %v2533_v13, %v1827_v23 }
0x2951   :  { %vm1834_vm7 = vmor %vm1828_vm5, %vm1833_vm6 }
0x2952   :  { %v1895_v28 = vsel %vm1834_vm7, 1.0, %v2441_v1 }
0x2953   :  { %v1857_v29 = vmul.f32 %v1895_v28, %v1856_v27 }
0x2955   :  { %v1858_v30 = vsel %vm108_vm4, %v1857_v29, 0.0 }
0x2967   :  { %1859 = vadd.xlane.f32.xlu1 %v1858_v30 }
0x29b5   :  { %v1848_v3 = vpop.permute.xlu1 %1847 }
0x29b6   :  { %v1850_v31 = vsel %vm108_vm4, %v1848_v3, 0.0 }
0x29b7   :  { %1851 = vadd.xlane.f32.xlu0 %v1850_v31 }
0x29f4   :  { %v1860_v0 = vpop.xlane.xlu1 %1859 }
0x2a44   :  { %v1852_v7 = vpop.xlane.xlu0 %1851 }
0x2a45   :  { %v1861_v32 = vadd.f32 %v1860_v0, %v1852_v7 }
0x2a47   :  { %1863 = vst.msk [vmem:[%s2835_s2] sm:$0xff] %vm1862_vm8, %v1861_v32 }
0x2a48   :  { %1868 = vsyncpa [#allocation4], 1 }
0x2a49   :  { %1869 = vsyncpa [#allocation6], 1 }

</bundles_post_ra>
